<compile_context>
chip_gen: v6e
topology: v6e:2x2x1
jax: 0.10.0
libtpu: 0.0.40
codegen_flags: <defaults>
</compile_context>

<pallas_src>
import numpy as np
import jax
import jax.numpy as jnp
from jax.experimental import pallas as pl
from jax.experimental.pallas import tpu as pltpu

# ----------------------------------------------------------------------------
# Deterministic JPEG constants (exactly as in the reference PyTorch module).
# ----------------------------------------------------------------------------
_Y_TABLE = np.array([
    [16, 11, 10, 16, 24, 40, 51, 61],
    [12, 12, 14, 19, 26, 58, 60, 55],
    [14, 13, 16, 24, 40, 57, 69, 56],
    [14, 17, 22, 29, 51, 87, 80, 62],
    [18, 22, 37, 56, 68, 109, 103, 77],
    [24, 35, 55, 64, 81, 104, 113, 92],
    [49, 64, 78, 87, 103, 121, 120, 101],
    [72, 92, 95, 98, 112, 100, 103, 99]], dtype=np.float64).T

_C_TABLE = np.full((8, 8), 99, dtype=np.float64)
_C_TABLE[:4, :4] = np.array([[17, 18, 24, 47], [18, 21, 26, 66],
                             [24, 26, 56, 99], [47, 66, 99, 99]],
                            dtype=np.float64).T


def _quality_to_factor(quality):
    if quality < 50:
        quality = 5000.0 / quality
    else:
        quality = 200.0 - quality * 2
    return quality / 100.0


def _dct_cos_matrix():
    c = np.zeros((8, 8), dtype=np.float64)
    for x in range(8):
        for u in range(8):
            c[x, u] = np.cos((2 * x + 1) * u * np.pi / 16.0)
    return c


_C = _dct_cos_matrix()
_ALPHA = np.array([1.0 / np.sqrt(2.0)] + [1.0] * 7, dtype=np.float64)
_ALPHA_88 = np.outer(_ALPHA, _ALPHA)
_SCALE_88 = _ALPHA_88 * 0.25


# ----------------------------------------------------------------------------
# Tiling helpers
# ----------------------------------------------------------------------------
def _divisor_tile(n, target, step):
    """Largest multiple of `step` that divides n and is <= target."""
    t = min(target, n)
    t -= t % step
    t = max(t, step)
    while t > step and n % t:
        t -= step
    return t


def _pick_tiles(B, H, W):
    # Lane chunk: divisor of W, multiple of 16, <= 256, preferring multiples
    # of 128 so luma chunks stay vreg-lane aligned.
    cands = [d for d in range(16, min(W, 256) + 1, 16) if W % d == 0]
    c128 = [d for d in cands if d % 128 == 0]
    cw = max(c128) if c128 else max(cands)
    # Row strip: divisor of H, multiple of 16, sized so double-buffered I/O
    # blocks stay ~10 MiB (v7x-safe under the default scoped VMEM limit),
    # capped at 256 rows to bound in-kernel unrolling.
    budget_rows = max(16, ((10 * 1024 * 1024) // (36 * W)) // 16 * 16)
    tr = _divisor_tile(H, min(256, budget_rows), 16)
    # Keep >= 4 grid tiles when possible so the "parallel" grid can shard
    # across both TensorCores on multi-TC chips (v7x).
    while B * (H // tr) < 4 and tr % 32 == 0:
        tr //= 2
    # In-kernel row chunk: divisor of tr, multiple of 16, <= 128 (bounds the
    # wasted MACs of the block-diagonal left DCT operators).
    rc = _divisor_tile(tr, min(128, tr), 16)
    return tr, rc, cw


# ----------------------------------------------------------------------------
# Operator construction (all constants are O(chunk^2), <= 64 KiB)
# ----------------------------------------------------------------------------
def _compress_operators(rc, cw, factor):
    """Block-diagonal DCT/IDCT operators + folded quant multipliers.

    Left operators act on rows (rc tall), right operators on lanes (cw wide).
    The chroma forward operators additionally fold the 2x2 average pool.
    """
    kron, eye = np.kron, np.eye
    qy = _Y_TABLE * factor
    qc = _C_TABLE * factor
    # Luma 8x8 DCT / IDCT per row/lane group.
    k_lf = kron(eye(rc // 8), _C.T)                  # (rc,   rc)
    k_li = kron(eye(rc // 8), _C)                    # (rc,   rc)
    k_rf = kron(eye(cw // 8), _C)                    # (cw,   cw)
    k_ri = kron(eye(cw // 8), _C.T)                  # (cw,   cw)
    # Chroma: fold the 2x2 average pool into the forward DCT operators.
    idx = np.arange(rc // 2)
    pv = np.zeros((rc // 2, rc))
    pv[idx, 2 * idx] = 0.5
    pv[idx, 2 * idx + 1] = 0.5
    jdx = np.arange(cw // 2)
    ph = np.zeros((cw, cw // 2))
    ph[2 * jdx, jdx] = 0.5
    ph[2 * jdx + 1, jdx] = 0.5
    k_lcf = kron(eye(rc // 16), _C.T) @ pv           # (rc/2, rc)
    k_rcf = ph @ kron(eye(cw // 16), _C)             # (cw,   cw/2)
    k_lci = kron(eye(rc // 16), _C)                  # (rc/2, rc/2)
    k_rci = kron(eye(cw // 16), _C.T)                # (cw/2, cw/2)
    # Tiled elementwise multipliers: forward = dct_scale / (table*factor),
    # inverse = (table*factor) * alpha * 0.25.
    qyf = np.tile(_SCALE_88 / qy, (rc // 8, cw // 8))
    qyi = np.tile(qy * _ALPHA_88 * 0.25, (rc // 8, cw // 8))
    qcf = np.tile(_SCALE_88 / qc, (rc // 16, cw // 16))
    qci = np.tile(qc * _ALPHA_88 * 0.25, (rc // 16, cw // 16))
    ops = (k_lf, k_li, k_lcf, k_lci, k_rf, k_ri, k_rcf, k_rci,
           qyf, qyi, qcf, qci)
    return [jnp.asarray(o.astype(np.float32)) for o in ops]


def _upsample_operators(tr, cw):
    """0/1 matmul operators for 2x nearest-neighbour chroma upsampling."""
    uv = np.zeros((tr, tr // 2), np.float32)
    uv[np.arange(tr), np.arange(tr) // 2] = 1.0
    uh = np.zeros((cw // 2, cw), np.float32)
    uh[np.arange(cw) // 2, np.arange(cw)] = 1.0
    return jnp.asarray(uv), jnp.asarray(uh)


# ----------------------------------------------------------------------------
# Pallas kernels
# ----------------------------------------------------------------------------
def _make_compress_kernel(tr, rc, cw, W):
    n_r = tr // rc
    n_c = W // cw

    def kernel(x_ref, lf_ref, li_ref, lcf_ref, lci_ref,
               rf_ref, ri_ref, rcf_ref, rci_ref,
               qyf_ref, qyi_ref, qcf_ref, qci_ref,
               y_ref, ch_ref):
        k_lf, k_li = lf_ref[...], li_ref[...]
        k_lcf, k_lci = lcf_ref[...], lci_ref[...]
        k_rf, k_ri = rf_ref[...], ri_ref[...]
        k_rcf, k_rci = rcf_ref[...], rci_ref[...]
        qyf, qyi = qyf_ref[...], qyi_ref[...]
        qcf, qci = qcf_ref[...], qci_ref[...]

        def mm(a, b):
            return jnp.dot(a, b, preferred_element_type=jnp.float32)

        def diff_round(v):
            rv = jnp.round(v)
            t = v - rv
            return rv + t * t * t

        # Statically unrolled (row chunk, lane chunk) sub-tiles; all slices
        # are static so they stay cheap ref views.
        # TODO(synk): switch to lax.fori_loop + pl.ds for very wide images if
        # the unrolled body count ever becomes a compile-time problem.
        for ii in range(n_r):
            r0 = ii * rc
            for jj in range(n_c):
                c0 = jj * cw
                red = x_ref[0, r0:r0 + rc, c0:c0 + cw] * 255.0
                grn = x_ref[1, r0:r0 + rc, c0:c0 + cw] * 255.0
                blu = x_ref[2, r0:r0 + rc, c0:c0 + cw] * 255.0
                yv = 0.299 * red + 0.587 * grn + 0.114 * blu
                # Chroma without the +128 shift: it cancels exactly against
                # the block DCT's -128 through the (weight-sum-1) fused
                # pool+DCT operators.
                cbv = -0.168736 * red - 0.331264 * grn + 0.5 * blu
                crv = 0.5 * red - 0.418688 * grn - 0.081312 * blu

                # Luma: DCT -> diff-round quantize -> dequantize -> IDCT.
                d = mm(mm(k_lf, yv - 128.0), k_rf) * qyf
                d = diff_round(d) * qyi
                y_ref[r0:r0 + rc, c0:c0 + cw] = mm(mm(k_li, d), k_ri) + 128.0

                # Chroma: (2x2 pool + DCT) -> quantize -> dequantize -> IDCT,
                # written at half resolution.
                for ch, cval in ((0, cbv), (1, crv)):
                    d = mm(mm(k_lcf, cval), k_rcf) * qcf
                    d = diff_round(d) * qci
                    ch_ref[ch, r0 // 2:r0 // 2 + rc // 2,
                           c0 // 2:c0 // 2 + cw // 2] = (
                               mm(mm(k_lci, d), k_rci) + 128.0)

    return kernel


def _make_decompress_kernel(tr, cw, W):
    n_c = W // cw

    def kernel(y_ref, ch_ref, uv_ref, uh_ref, o_ref):
        uv = uv_ref[...]
        uh = uh_ref[...]

        def mm(a, b):
            return jnp.dot(a, b, preferred_element_type=jnp.float32)

        for jj in range(n_c):
            c0 = jj * cw
            h0 = c0 // 2
            yv = y_ref[:, c0:c0 + cw]
            cb = ch_ref[0, :, h0:h0 + cw // 2]
            cr = ch_ref[1, :, h0:h0 + cw // 2]
            # 2x nearest-neighbour upsample via 0/1 matmuls, fused here
            # instead of a full-resolution XLA materialization.
            cbu = mm(mm(uv, cb), uh) - 128.0
            cru = mm(mm(uv, cr), uh) - 128.0
            r = yv + 1.402 * cru
            g = yv - 0.344136 * cbu - 0.714136 * cru
            b = yv + 1.772 * cbu
            o_ref[0, :, c0:c0 + cw] = jnp.clip(r, 0.0, 255.0) / 255.0
            o_ref[1, :, c0:c0 + cw] = jnp.clip(g, 0.0, 255.0) / 255.0
            o_ref[2, :, c0:c0 + cw] = jnp.clip(b, 0.0, 255.0) / 255.0

    return kernel


# ----------------------------------------------------------------------------
# pallas_call wrappers
# ----------------------------------------------------------------------------
def _compress_call(x, ops, tr, rc, cw):
    B, _, H, W = x.shape
    op_specs = [pl.BlockSpec(o.shape, lambda b, i: (0, 0)) for o in ops]
    op_bytes = int(sum(4 * o.size for o in ops))
    flops = int(B * H * W * (6 * (rc + cw) + 60))
    bytes_acc = int(18 * B * H * W) + op_bytes
    return pl.pallas_call(
        _make_compress_kernel(tr, rc, cw, W),
        grid=(B, H // tr),
        in_specs=[pl.BlockSpec((None, 3, tr, W), lambda b, i: (b, 0, i, 0))]
                 + op_specs,
        out_specs=(
            pl.BlockSpec((None, tr, W), lambda b, i: (b, i, 0)),
            pl.BlockSpec((None, 2, tr // 2, W // 2),
                         lambda b, i: (b, 0, i, 0)),
        ),
        out_shape=(
            jax.ShapeDtypeStruct((B, H, W), jnp.float32),
            jax.ShapeDtypeStruct((B, 2, H // 2, W // 2), jnp.float32),
        ),
        compiler_params=pltpu.CompilerParams(
            dimension_semantics=("parallel", "parallel")),
        cost_estimate=pl.CostEstimate(flops=flops, transcendentals=0,
                                      bytes_accessed=bytes_acc),
    )(x, *ops)


def _decompress_call(y, chroma, uv, uh, tr, cw):
    B, H, W = y.shape
    flops = int(B * H * W * (tr + 2 * cw + 30))
    bytes_acc = int(18 * B * H * W + 4 * (uv.size + uh.size))
    return pl.pallas_call(
        _make_decompress_kernel(tr, cw, W),
        grid=(B, H // tr),
        in_specs=[
            pl.BlockSpec((None, tr, W), lambda b, i: (b, i, 0)),
            pl.BlockSpec((None, 2, tr // 2, W // 2),
                         lambda b, i: (b, 0, i, 0)),
            pl.BlockSpec(uv.shape, lambda b, i: (0, 0)),
            pl.BlockSpec(uh.shape, lambda b, i: (0, 0)),
        ],
        out_specs=pl.BlockSpec((None, 3, tr, W), lambda b, i: (b, 0, i, 0)),
        out_shape=jax.ShapeDtypeStruct((B, 3, H, W), jnp.float32),
        compiler_params=pltpu.CompilerParams(
            dimension_semantics=("parallel", "parallel")),
        cost_estimate=pl.CostEstimate(flops=flops, transcendentals=0,
                                      bytes_accessed=bytes_acc),
    )(y, chroma, uv, uh)


# ----------------------------------------------------------------------------
# DiffJPEG forward (compress + decompress)
# ----------------------------------------------------------------------------
def diff_jpeg(x, quality=5):
    """x: [B, 3, H, W] float32 in [0,1]; H, W multiples of 16. Same shape out."""
    B, C, H, W = x.shape
    assert C == 3 and H % 16 == 0 and W % 16 == 0
    factor = _quality_to_factor(quality)
    tr, rc, cw = _pick_tiles(B, H, W)
    ops = _compress_operators(rc, cw, factor)
    uv, uh = _upsample_operators(tr, cw)

    x = x.astype(jnp.float32)
    # Kernel 1: colorspace + chroma pool + blockwise DCT/quant/dequant/IDCT.
    y_rec, chroma_rec = _compress_call(x, ops, tr, rc, cw)
    # Kernel 2: chroma upsample + colorspace back + clamp + /255.
    return _decompress_call(y_rec, chroma_rec, uv, uh, tr, cw)


if __name__ == "__main__":
    key = jax.random.PRNGKey(0)
    x = jax.random.uniform(key, (2, 3, 16, 16), dtype=jnp.float32)
    out = jax.jit(diff_jpeg)(x)
    jax.block_until_ready(out)
    assert out.shape == (2, 3, 16, 16)
    assert bool(jnp.all(jnp.isfinite(out)))
    assert float(jnp.min(out)) >= 0.0 and float(jnp.max(out)) <= 1.0
    print("KERNEL_OK")
</pallas_src>

<mosaic_0001>
module attributes {stable_mosaic.version = 11 : i64} {
  func.func @kernel(%arg0: i32, %arg1: i32, %arg2: memref<1x16x16xf32, #tpu.memory_space<vmem>>, %arg3: memref<1x2x8x8xf32, #tpu.memory_space<vmem>>, %arg4: memref<16x8xf32, #tpu.memory_space<vmem>>, %arg5: memref<8x16xf32, #tpu.memory_space<vmem>>, %arg6: memref<1x3x16x16xf32, #tpu.memory_space<vmem>>) attributes {dimension_semantics = [#tpu.dimension_semantics<parallel>, #tpu.dimension_semantics<parallel>], iteration_bounds = array<i64: 2, 1>, scalar_prefetch = 0 : i64, scratch_operands = 0 : i64, tpu.core_type = #tpu.core_type<tc>, window_params = [{transform_indices = @transform_0, window_bounds = array<i64: 1, 16, 16>}, {transform_indices = @transform_1, window_bounds = array<i64: 1, 2, 8, 8>}, {pipeline_mode = #tpu.pipeline_mode<synchronous>, transform_indices = @transform_2, window_bounds = array<i64: 16, 8>}, {pipeline_mode = #tpu.pipeline_mode<synchronous>, transform_indices = @transform_3, window_bounds = array<i64: 8, 16>}, {transform_indices = @transform_4, window_bounds = array<i64: 1, 3, 16, 16>}]} {
    %c0 = arith.constant 0 : index
    %c0_0 = arith.constant 0 : index
    %0 = vector.load %arg4[%c0, %c0_0] : memref<16x8xf32, #tpu.memory_space<vmem>>, vector<16x8xf32>
    %c0_1 = arith.constant 0 : index
    %c0_2 = arith.constant 0 : index
    %1 = vector.load %arg5[%c0_1, %c0_2] : memref<8x16xf32, #tpu.memory_space<vmem>>, vector<8x16xf32>
    %c0_3 = arith.constant 0 : index
    %c0_4 = arith.constant 0 : index
    %c0_5 = arith.constant 0 : index
    %2 = vector.load %arg2[%c0_3, %c0_4, %c0_5] : memref<1x16x16xf32, #tpu.memory_space<vmem>>, vector<1x16x16xf32>
    %3 = vector.shape_cast %2 : vector<1x16x16xf32> to vector<16x16xf32>
    %c0_6 = arith.constant 0 : index
    %c0_7 = arith.constant 0 : index
    %c0_8 = arith.constant 0 : index
    %c0_9 = arith.constant 0 : index
    %4 = vector.load %arg3[%c0_6, %c0_7, %c0_8, %c0_9] : memref<1x2x8x8xf32, #tpu.memory_space<vmem>>, vector<1x1x8x8xf32>
    %5 = vector.shape_cast %4 : vector<1x1x8x8xf32> to vector<8x8xf32>
    %c0_10 = arith.constant 0 : index
    %c1 = arith.constant 1 : index
    %c0_11 = arith.constant 0 : index
    %c0_12 = arith.constant 0 : index
    %6 = vector.load %arg3[%c0_10, %c1, %c0_11, %c0_12] : memref<1x2x8x8xf32, #tpu.memory_space<vmem>>, vector<1x1x8x8xf32>
    %7 = vector.shape_cast %6 : vector<1x1x8x8xf32> to vector<8x8xf32>
    %cst = arith.constant dense<0.000000e+00> : vector<16x8xf32>
    %8 = tpu.matmul %0, %5, %cst {dimension_numbers = #tpu.dot_dimension_numbers<[1], [0], [0], [1], [0, 0, 1, 1], [], []>} : vector<16x8xf32>, vector<8x8xf32>, vector<16x8xf32> -> vector<16x8xf32>
    %cst_13 = arith.constant dense<0.000000e+00> : vector<16x16xf32>
    %9 = tpu.matmul %8, %1, %cst_13 {dimension_numbers = #tpu.dot_dimension_numbers<[1], [0], [0], [1], [0, 0, 1, 1], [], []>} : vector<16x8xf32>, vector<8x16xf32>, vector<16x16xf32> -> vector<16x16xf32>
    %cst_14 = arith.constant 1.280000e+02 : f32
    %10 = vector.broadcast %cst_14 : f32 to vector<16x16xf32>
    %11 = arith.subf %9, %10 : vector<16x16xf32>
    %cst_15 = arith.constant dense<0.000000e+00> : vector<16x8xf32>
    %12 = tpu.matmul %0, %7, %cst_15 {dimension_numbers = #tpu.dot_dimension_numbers<[1], [0], [0], [1], [0, 0, 1, 1], [], []>} : vector<16x8xf32>, vector<8x8xf32>, vector<16x8xf32> -> vector<16x8xf32>
    %cst_16 = arith.constant dense<0.000000e+00> : vector<16x16xf32>
    %13 = tpu.matmul %12, %1, %cst_16 {dimension_numbers = #tpu.dot_dimension_numbers<[1], [0], [0], [1], [0, 0, 1, 1], [], []>} : vector<16x8xf32>, vector<8x16xf32>, vector<16x16xf32> -> vector<16x16xf32>
    %cst_17 = arith.constant 1.280000e+02 : f32
    %14 = vector.broadcast %cst_17 : f32 to vector<16x16xf32>
    %15 = arith.subf %13, %14 : vector<16x16xf32>
    %cst_18 = arith.constant 1.402000e+00 : f32
    %16 = vector.broadcast %cst_18 : f32 to vector<16x16xf32>
    %17 = arith.mulf %16, %15 : vector<16x16xf32>
    %18 = arith.addf %3, %17 : vector<16x16xf32>
    %cst_19 = arith.constant 3.441360e-01 : f32
    %19 = vector.broadcast %cst_19 : f32 to vector<16x16xf32>
    %20 = arith.mulf %19, %11 : vector<16x16xf32>
    %21 = arith.subf %3, %20 : vector<16x16xf32>
    %cst_20 = arith.constant 7.141360e-01 : f32
    %22 = vector.broadcast %cst_20 : f32 to vector<16x16xf32>
    %23 = arith.mulf %22, %15 : vector<16x16xf32>
    %24 = arith.subf %21, %23 : vector<16x16xf32>
    %cst_21 = arith.constant 1.772000e+00 : f32
    %25 = vector.broadcast %cst_21 : f32 to vector<16x16xf32>
    %26 = arith.mulf %25, %11 : vector<16x16xf32>
    %27 = arith.addf %3, %26 : vector<16x16xf32>
    %cst_22 = arith.constant 0.000000e+00 : f32
    %cst_23 = arith.constant 2.550000e+02 : f32
    %28 = vector.broadcast %cst_22 : f32 to vector<16x16xf32>
    %29 = arith.maximumf %28, %18 : vector<16x16xf32>
    %30 = vector.broadcast %cst_23 : f32 to vector<16x16xf32>
    %31 = arith.minimumf %30, %29 : vector<16x16xf32>
    %cst_24 = arith.constant 2.550000e+02 : f32
    %32 = vector.broadcast %cst_24 : f32 to vector<16x16xf32>
    %33 = arith.divf %31, %32 : vector<16x16xf32>
    %c0_25 = arith.constant 0 : index
    %c0_26 = arith.constant 0 : index
    %c0_27 = arith.constant 0 : index
    %c0_28 = arith.constant 0 : index
    %34 = vector.load %arg6[%c0_25, %c0_26, %c0_27, %c0_28] : memref<1x3x16x16xf32, #tpu.memory_space<vmem>>, vector<1x1x16x16xf32>
    %35 = vector.shape_cast %34 : vector<1x1x16x16xf32> to vector<16x16xf32>
    %36 = vector.shape_cast %33 : vector<16x16xf32> to vector<1x1x16x16xf32>
    tpu.vector_store %arg6[%c0_25, %c0_26, %c0_27, %c0_28], %36 {strides = array<i32>} : memref<1x3x16x16xf32, #tpu.memory_space<vmem>>, vector<1x1x16x16xf32>,
    %cst_29 = arith.constant 0.000000e+00 : f32
    %cst_30 = arith.constant 2.550000e+02 : f32
    %37 = vector.broadcast %cst_29 : f32 to vector<16x16xf32>
    %38 = arith.maximumf %37, %24 : vector<16x16xf32>
    %39 = vector.broadcast %cst_30 : f32 to vector<16x16xf32>
    %40 = arith.minimumf %39, %38 : vector<16x16xf32>
    %cst_31 = arith.constant 2.550000e+02 : f32
    %41 = vector.broadcast %cst_31 : f32 to vector<16x16xf32>
    %42 = arith.divf %40, %41 : vector<16x16xf32>
    %c0_32 = arith.constant 0 : index
    %c1_33 = arith.constant 1 : index
    %c0_34 = arith.constant 0 : index
    %c0_35 = arith.constant 0 : index
    %43 = vector.load %arg6[%c0_32, %c1_33, %c0_34, %c0_35] : memref<1x3x16x16xf32, #tpu.memory_space<vmem>>, vector<1x1x16x16xf32>
    %44 = vector.shape_cast %43 : vector<1x1x16x16xf32> to vector<16x16xf32>
    %45 = vector.shape_cast %42 : vector<16x16xf32> to vector<1x1x16x16xf32>
    tpu.vector_store %arg6[%c0_32, %c1_33, %c0_34, %c0_35], %45 {strides = array<i32>} : memref<1x3x16x16xf32, #tpu.memory_space<vmem>>, vector<1x1x16x16xf32>,
    %cst_36 = arith.constant 0.000000e+00 : f32
    %cst_37 = arith.constant 2.550000e+02 : f32
    %46 = vector.broadcast %cst_36 : f32 to vector<16x16xf32>
    %47 = arith.maximumf %46, %27 : vector<16x16xf32>
    %48 = vector.broadcast %cst_37 : f32 to vector<16x16xf32>
    %49 = arith.minimumf %48, %47 : vector<16x16xf32>
    %cst_38 = arith.constant 2.550000e+02 : f32
    %50 = vector.broadcast %cst_38 : f32 to vector<16x16xf32>
    %51 = arith.divf %49, %50 : vector<16x16xf32>
    %c0_39 = arith.constant 0 : index
    %c2 = arith.constant 2 : index
    %c0_40 = arith.constant 0 : index
    %c0_41 = arith.constant 0 : index
    %52 = vector.load %arg6[%c0_39, %c2, %c0_40, %c0_41] : memref<1x3x16x16xf32, #tpu.memory_space<vmem>>, vector<1x1x16x16xf32>
    %53 = vector.shape_cast %52 : vector<1x1x16x16xf32> to vector<16x16xf32>
    %54 = vector.shape_cast %51 : vector<16x16xf32> to vector<1x1x16x16xf32>
    tpu.vector_store %arg6[%c0_39, %c2, %c0_40, %c0_41], %54 {strides = array<i32>} : memref<1x3x16x16xf32, #tpu.memory_space<vmem>>, vector<1x1x16x16xf32>,
    return
  }
  func.func @transform_0(%arg0: i32, %arg1: i32) -> (i32, i32, i32) {
    %c0_i32 = arith.constant 0 : i32
    %c0_i32_0 = arith.constant 0 : i32
    return %arg0, %arg1, %c0_i32 : i32, i32, i32
  }
  func.func @transform_1(%arg0: i32, %arg1: i32) -> (i32, i32, i32, i32) {
    %c0_i32 = arith.constant 0 : i32
    %c0_i32_0 = arith.constant 0 : i32
    %c0_i32_1 = arith.constant 0 : i32
    return %arg0, %c0_i32, %arg1, %c0_i32_0 : i32, i32, i32, i32
  }
  func.func @transform_2(%arg0: i32, %arg1: i32) -> (i32, i32) {
    %c0_i32 = arith.constant 0 : i32
    %c0_i32_0 = arith.constant 0 : i32
    %c0_i32_1 = arith.constant 0 : i32
    return %c0_i32, %c0_i32_0 : i32, i32
  }
  func.func @transform_3(%arg0: i32, %arg1: i32) -> (i32, i32) {
    %c0_i32 = arith.constant 0 : i32
    %c0_i32_0 = arith.constant 0 : i32
    %c0_i32_1 = arith.constant 0 : i32
    return %c0_i32, %c0_i32_0 : i32, i32
  }
  func.func @transform_4(%arg0: i32, %arg1: i32) -> (i32, i32, i32, i32) {
    %c0_i32 = arith.constant 0 : i32
    %c0_i32_0 = arith.constant 0 : i32
    %c0_i32_1 = arith.constant 0 : i32
    return %arg0, %c0_i32, %arg1, %c0_i32_0 : i32, i32, i32, i32
  }
}

module attributes {stable_mosaic.version = 11 : i64} {
  func.func @kernel(%arg0: i32, %arg1: i32, %arg2: memref<1x3x16x16xf32, #tpu.memory_space<vmem>>, %arg3: memref<16x16xf32, #tpu.memory_space<vmem>>, %arg4: memref<16x16xf32, #tpu.memory_space<vmem>>, %arg5: memref<8x16xf32, #tpu.memory_space<vmem>>, %arg6: memref<8x8xf32, #tpu.memory_space<vmem>>, %arg7: memref<16x16xf32, #tpu.memory_space<vmem>>, %arg8: memref<16x16xf32, #tpu.memory_space<vmem>>, %arg9: memref<16x8xf32, #tpu.memory_space<vmem>>, %arg10: memref<8x8xf32, #tpu.memory_space<vmem>>, %arg11: memref<16x16xf32, #tpu.memory_space<vmem>>, %arg12: memref<16x16xf32, #tpu.memory_space<vmem>>, %arg13: memref<8x8xf32, #tpu.memory_space<vmem>>, %arg14: memref<8x8xf32, #tpu.memory_space<vmem>>, %arg15: memref<1x16x16xf32, #tpu.memory_space<vmem>>, %arg16: memref<1x2x8x8xf32, #tpu.memory_space<vmem>>) attributes {dimension_semantics = [#tpu.dimension_semantics<parallel>, #tpu.dimension_semantics<parallel>], iteration_bounds = array<i64: 2, 1>, scalar_prefetch = 0 : i64, scratch_operands = 0 : i64, tpu.core_type = #tpu.core_type<tc>, window_params = [{transform_indices = @transform_0, window_bounds = array<i64: 1, 3, 16, 16>}, {pipeline_mode = #tpu.pipeline_mode<synchronous>, transform_indices = @transform_1, window_bounds = array<i64: 16, 16>}, {pipeline_mode = #tpu.pipeline_mode<synchronous>, transform_indices = @transform_2, window_bounds = array<i64: 16, 16>}, {pipeline_mode = #tpu.pipeline_mode<synchronous>, transform_indices = @transform_3, window_bounds = array<i64: 8, 16>}, {pipeline_mode = #tpu.pipeline_mode<synchronous>, transform_indices = @transform_4, window_bounds = array<i64: 8, 8>}, {pipeline_mode = #tpu.pipeline_mode<synchronous>, transform_indices = @transform_5, window_bounds = array<i64: 16, 16>}, {pipeline_mode = #tpu.pipeline_mode<synchronous>, transform_indices = @transform_6, window_bounds = array<i64: 16, 16>}, {pipeline_mode = #tpu.pipeline_mode<synchronous>, transform_indices = @transform_7, window_bounds = array<i64: 16, 8>}, {pipeline_mode = #tpu.pipeline_mode<synchronous>, transform_indices = @transform_8, window_bounds = array<i64: 8, 8>}, {pipeline_mode = #tpu.pipeline_mode<synchronous>, transform_indices = @transform_9, window_bounds = array<i64: 16, 16>}, {pipeline_mode = #tpu.pipeline_mode<synchronous>, transform_indices = @transform_10, window_bounds = array<i64: 16, 16>}, {pipeline_mode = #tpu.pipeline_mode<synchronous>, transform_indices = @transform_11, window_bounds = array<i64: 8, 8>}, {pipeline_mode = #tpu.pipeline_mode<synchronous>, transform_indices = @transform_12, window_bounds = array<i64: 8, 8>}, {transform_indices = @transform_13, window_bounds = array<i64: 1, 16, 16>}, {transform_indices = @transform_14, window_bounds = array<i64: 1, 2, 8, 8>}]} {
    %c0 = arith.constant 0 : index
    %c0_0 = arith.constant 0 : index
    %0 = vector.load %arg3[%c0, %c0_0] : memref<16x16xf32, #tpu.memory_space<vmem>>, vector<16x16xf32>
    %c0_1 = arith.constant 0 : index
    %c0_2 = arith.constant 0 : index
    %1 = vector.load %arg4[%c0_1, %c0_2] : memref<16x16xf32, #tpu.memory_space<vmem>>, vector<16x16xf32>
    %c0_3 = arith.constant 0 : index
    %c0_4 = arith.constant 0 : index
    %2 = vector.load %arg5[%c0_3, %c0_4] : memref<8x16xf32, #tpu.memory_space<vmem>>, vector<8x16xf32>
    %c0_5 = arith.constant 0 : index
    %c0_6 = arith.constant 0 : index
    %3 = vector.load %arg6[%c0_5, %c0_6] : memref<8x8xf32, #tpu.memory_space<vmem>>, vector<8x8xf32>
    %c0_7 = arith.constant 0 : index
    %c0_8 = arith.constant 0 : index
    %4 = vector.load %arg7[%c0_7, %c0_8] : memref<16x16xf32, #tpu.memory_space<vmem>>, vector<16x16xf32>
    %c0_9 = arith.constant 0 : index
    %c0_10 = arith.constant 0 : index
    %5 = vector.load %arg8[%c0_9, %c0_10] : memref<16x16xf32, #tpu.memory_space<vmem>>, vector<16x16xf32>
    %c0_11 = arith.constant 0 : index
    %c0_12 = arith.constant 0 : index
    %6 = vector.load %arg9[%c0_11, %c0_12] : memref<16x8xf32, #tpu.memory_space<vmem>>, vector<16x8xf32>
    %c0_13 = arith.constant 0 : index
    %c0_14 = arith.constant 0 : index
    %7 = vector.load %arg10[%c0_13, %c0_14] : memref<8x8xf32, #tpu.memory_space<vmem>>, vector<8x8xf32>
    %c0_15 = arith.constant 0 : index
    %c0_16 = arith.constant 0 : index
    %8 = vector.load %arg11[%c0_15, %c0_16] : memref<16x16xf32, #tpu.memory_space<vmem>>, vector<16x16xf32>
    %c0_17 = arith.constant 0 : index
    %c0_18 = arith.constant 0 : index
    %9 = vector.load %arg12[%c0_17, %c0_18] : memref<16x16xf32, #tpu.memory_space<vmem>>, vector<16x16xf32>
    %c0_19 = arith.constant 0 : index
    %c0_20 = arith.constant 0 : index
    %10 = vector.load %arg13[%c0_19, %c0_20] : memref<8x8xf32, #tpu.memory_space<vmem>>, vector<8x8xf32>
    %c0_21 = arith.constant 0 : index
    %c0_22 = arith.constant 0 : index
    %11 = vector.load %arg14[%c0_21, %c0_22] : memref<8x8xf32, #tpu.memory_space<vmem>>, vector<8x8xf32>
    %c0_23 = arith.constant 0 : index
    %c0_24 = arith.constant 0 : index
    %c0_25 = arith.constant 0 : index
    %c0_26 = arith.constant 0 : index
    %12 = vector.load %arg2[%c0_23, %c0_24, %c0_25, %c0_26] : memref<1x3x16x16xf32, #tpu.memory_space<vmem>>, vector<1x1x16x16xf32>
    %13 = vector.shape_cast %12 : vector<1x1x16x16xf32> to vector<16x16xf32>
    %cst = arith.constant 2.550000e+02 : f32
    %14 = vector.broadcast %cst : f32 to vector<16x16xf32>
    %15 = arith.mulf %13, %14 : vector<16x16xf32>
    %c0_27 = arith.constant 0 : index
    %c1 = arith.constant 1 : index
    %c0_28 = arith.constant 0 : index
    %c0_29 = arith.constant 0 : index
    %16 = vector.load %arg2[%c0_27, %c1, %c0_28, %c0_29] : memref<1x3x16x16xf32, #tpu.memory_space<vmem>>, vector<1x1x16x16xf32>
    %17 = vector.shape_cast %16 : vector<1x1x16x16xf32> to vector<16x16xf32>
    %cst_30 = arith.constant 2.550000e+02 : f32
    %18 = vector.broadcast %cst_30 : f32 to vector<16x16xf32>
    %19 = arith.mulf %17, %18 : vector<16x16xf32>
    %c0_31 = arith.constant 0 : index
    %c2 = arith.constant 2 : index
    %c0_32 = arith.constant 0 : index
    %c0_33 = arith.constant 0 : index
    %20 = vector.load %arg2[%c0_31, %c2, %c0_32, %c0_33] : memref<1x3x16x16xf32, #tpu.memory_space<vmem>>, vector<1x1x16x16xf32>
    %21 = vector.shape_cast %20 : vector<1x1x16x16xf32> to vector<16x16xf32>
    %cst_34 = arith.constant 2.550000e+02 : f32
    %22 = vector.broadcast %cst_34 : f32 to vector<16x16xf32>
    %23 = arith.mulf %21, %22 : vector<16x16xf32>
    %cst_35 = arith.constant 2.990000e-01 : f32
    %24 = vector.broadcast %cst_35 : f32 to vector<16x16xf32>
    %25 = arith.mulf %24, %15 : vector<16x16xf32>
    %cst_36 = arith.constant 5.870000e-01 : f32
    %26 = vector.broadcast %cst_36 : f32 to vector<16x16xf32>
    %27 = arith.mulf %26, %19 : vector<16x16xf32>
    %28 = arith.addf %25, %27 : vector<16x16xf32>
    %cst_37 = arith.constant 1.140000e-01 : f32
    %29 = vector.broadcast %cst_37 : f32 to vector<16x16xf32>
    %30 = arith.mulf %29, %23 : vector<16x16xf32>
    %31 = arith.addf %28, %30 : vector<16x16xf32>
    %cst_38 = arith.constant -1.687360e-01 : f32
    %32 = vector.broadcast %cst_38 : f32 to vector<16x16xf32>
    %33 = arith.mulf %32, %15 : vector<16x16xf32>
    %cst_39 = arith.constant 3.312640e-01 : f32
    %34 = vector.broadcast %cst_39 : f32 to vector<16x16xf32>
    %35 = arith.mulf %34, %19 : vector<16x16xf32>
    %36 = arith.subf %33, %35 : vector<16x16xf32>
    %cst_40 = arith.constant 5.000000e-01 : f32
    %37 = vector.broadcast %cst_40 : f32 to vector<16x16xf32>
    %38 = arith.mulf %37, %23 : vector<16x16xf32>
    %39 = arith.addf %36, %38 : vector<16x16xf32>
    %cst_41 = arith.constant 5.000000e-01 : f32
    %40 = vector.broadcast %cst_41 : f32 to vector<16x16xf32>
    %41 = arith.mulf %40, %15 : vector<16x16xf32>
    %cst_42 = arith.constant 4.186880e-01 : f32
    %42 = vector.broadcast %cst_42 : f32 to vector<16x16xf32>
    %43 = arith.mulf %42, %19 : vector<16x16xf32>
    %44 = arith.subf %41, %43 : vector<16x16xf32>
    %cst_43 = arith.constant 8.131200e-02 : f32
    %45 = vector.broadcast %cst_43 : f32 to vector<16x16xf32>
    %46 = arith.mulf %45, %23 : vector<16x16xf32>
    %47 = arith.subf %44, %46 : vector<16x16xf32>
    %cst_44 = arith.constant 1.280000e+02 : f32
    %48 = vector.broadcast %cst_44 : f32 to vector<16x16xf32>
    %49 = arith.subf %31, %48 : vector<16x16xf32>
    %cst_45 = arith.constant dense<0.000000e+00> : vector<16x16xf32>
    %50 = tpu.matmul %0, %49, %cst_45 {dimension_numbers = #tpu.dot_dimension_numbers<[1], [0], [0], [1], [0, 0, 1, 1], [], []>} : vector<16x16xf32>, vector<16x16xf32>, vector<16x16xf32> -> vector<16x16xf32>
    %cst_46 = arith.constant dense<0.000000e+00> : vector<16x16xf32>
    %51 = tpu.matmul %50, %4, %cst_46 {dimension_numbers = #tpu.dot_dimension_numbers<[1], [0], [0], [1], [0, 0, 1, 1], [], []>} : vector<16x16xf32>, vector<16x16xf32>, vector<16x16xf32> -> vector<16x16xf32>
    %52 = arith.mulf %51, %8 : vector<16x16xf32>
    %53 = math.roundeven %52 : vector<16x16xf32>
    %54 = arith.subf %52, %53 : vector<16x16xf32>
    %55 = arith.mulf %54, %54 : vector<16x16xf32>
    %56 = arith.mulf %55, %54 : vector<16x16xf32>
    %57 = arith.addf %53, %56 : vector<16x16xf32>
    %58 = arith.mulf %57, %9 : vector<16x16xf32>
    %cst_47 = arith.constant dense<0.000000e+00> : vector<16x16xf32>
    %59 = tpu.matmul %1, %58, %cst_47 {dimension_numbers = #tpu.dot_dimension_numbers<[1], [0], [0], [1], [0, 0, 1, 1], [], []>} : vector<16x16xf32>, vector<16x16xf32>, vector<16x16xf32> -> vector<16x16xf32>
    %cst_48 = arith.constant dense<0.000000e+00> : vector<16x16xf32>
    %60 = tpu.matmul %59, %5, %cst_48 {dimension_numbers = #tpu.dot_dimension_numbers<[1], [0], [0], [1], [0, 0, 1, 1], [], []>} : vector<16x16xf32>, vector<16x16xf32>, vector<16x16xf32> -> vector<16x16xf32>
    %cst_49 = arith.constant 1.280000e+02 : f32
    %61 = vector.broadcast %cst_49 : f32 to vector<16x16xf32>
    %62 = arith.addf %60, %61 : vector<16x16xf32>
    %c0_50 = arith.constant 0 : index
    %c0_51 = arith.constant 0 : index
    %c0_52 = arith.constant 0 : index
    %63 = vector.load %arg15[%c0_50, %c0_51, %c0_52] : memref<1x16x16xf32, #tpu.memory_space<vmem>>, vector<1x16x16xf32>
    %64 = vector.shape_cast %63 : vector<1x16x16xf32> to vector<16x16xf32>
    %65 = vector.shape_cast %62 : vector<16x16xf32> to vector<1x16x16xf32>
    tpu.vector_store %arg15[%c0_50, %c0_51, %c0_52], %65 {strides = array<i32>} : memref<1x16x16xf32, #tpu.memory_space<vmem>>, vector<1x16x16xf32>,
    %cst_53 = arith.constant dense<0.000000e+00> : vector<8x16xf32>
    %66 = tpu.matmul %2, %39, %cst_53 {dimension_numbers = #tpu.dot_dimension_numbers<[1], [0], [0], [1], [0, 0, 1, 1], [], []>} : vector<8x16xf32>, vector<16x16xf32>, vector<8x16xf32> -> vector<8x16xf32>
    %cst_54 = arith.constant dense<0.000000e+00> : vector<8x8xf32>
    %67 = tpu.matmul %66, %6, %cst_54 {dimension_numbers = #tpu.dot_dimension_numbers<[1], [0], [0], [1], [0, 0, 1, 1], [], []>} : vector<8x16xf32>, vector<16x8xf32>, vector<8x8xf32> -> vector<8x8xf32>
    %68 = arith.mulf %67, %10 : vector<8x8xf32>
    %69 = math.roundeven %68 : vector<8x8xf32>
    %70 = arith.subf %68, %69 : vector<8x8xf32>
    %71 = arith.mulf %70, %70 : vector<8x8xf32>
    %72 = arith.mulf %71, %70 : vector<8x8xf32>
    %73 = arith.addf %69, %72 : vector<8x8xf32>
    %74 = arith.mulf %73, %11 : vector<8x8xf32>
    %cst_55 = arith.constant dense<0.000000e+00> : vector<8x8xf32>
    %75 = tpu.matmul %3, %74, %cst_55 {dimension_numbers = #tpu.dot_dimension_numbers<[1], [0], [0], [1], [0, 0, 1, 1], [], []>} : vector<8x8xf32>, vector<8x8xf32>, vector<8x8xf32> -> vector<8x8xf32>
    %cst_56 = arith.constant dense<0.000000e+00> : vector<8x8xf32>
    %76 = tpu.matmul %75, %7, %cst_56 {dimension_numbers = #tpu.dot_dimension_numbers<[1], [0], [0], [1], [0, 0, 1, 1], [], []>} : vector<8x8xf32>, vector<8x8xf32>, vector<8x8xf32> -> vector<8x8xf32>
    %cst_57 = arith.constant 1.280000e+02 : f32
    %77 = vector.broadcast %cst_57 : f32 to vector<8x8xf32>
    %78 = arith.addf %76, %77 : vector<8x8xf32>
    %c0_58 = arith.constant 0 : index
    %c0_59 = arith.constant 0 : index
    %c0_60 = arith.constant 0 : index
    %c0_61 = arith.constant 0 : index
    %79 = vector.load %arg16[%c0_58, %c0_59, %c0_60, %c0_61] : memref<1x2x8x8xf32, #tpu.memory_space<vmem>>, vector<1x1x8x8xf32>
    %80 = vector.shape_cast %79 : vector<1x1x8x8xf32> to vector<8x8xf32>
    %81 = vector.shape_cast %78 : vector<8x8xf32> to vector<1x1x8x8xf32>
    tpu.vector_store %arg16[%c0_58, %c0_59, %c0_60, %c0_61], %81 {strides = array<i32>} : memref<1x2x8x8xf32, #tpu.memory_space<vmem>>, vector<1x1x8x8xf32>,
    %cst_62 = arith.constant dense<0.000000e+00> : vector<8x16xf32>
    %82 = tpu.matmul %2, %47, %cst_62 {dimension_numbers = #tpu.dot_dimension_numbers<[1], [0], [0], [1], [0, 0, 1, 1], [], []>} : vector<8x16xf32>, vector<16x16xf32>, vector<8x16xf32> -> vector<8x16xf32>
    %cst_63 = arith.constant dense<0.000000e+00> : vector<8x8xf32>
    %83 = tpu.matmul %82, %6, %cst_63 {dimension_numbers = #tpu.dot_dimension_numbers<[1], [0], [0], [1], [0, 0, 1, 1], [], []>} : vector<8x16xf32>, vector<16x8xf32>, vector<8x8xf32> -> vector<8x8xf32>
    %84 = arith.mulf %83, %10 : vector<8x8xf32>
    %85 = math.roundeven %84 : vector<8x8xf32>
    %86 = arith.subf %84, %85 : vector<8x8xf32>
    %87 = arith.mulf %86, %86 : vector<8x8xf32>
    %88 = arith.mulf %87, %86 : vector<8x8xf32>
    %89 = arith.addf %85, %88 : vector<8x8xf32>
    %90 = arith.mulf %89, %11 : vector<8x8xf32>
    %cst_64 = arith.constant dense<0.000000e+00> : vector<8x8xf32>
    %91 = tpu.matmul %3, %90, %cst_64 {dimension_numbers = #tpu.dot_dimension_numbers<[1], [0], [0], [1], [0, 0, 1, 1], [], []>} : vector<8x8xf32>, vector<8x8xf32>, vector<8x8xf32> -> vector<8x8xf32>
    %cst_65 = arith.constant dense<0.000000e+00> : vector<8x8xf32>
    %92 = tpu.matmul %91, %7, %cst_65 {dimension_numbers = #tpu.dot_dimension_numbers<[1], [0], [0], [1], [0, 0, 1, 1], [], []>} : vector<8x8xf32>, vector<8x8xf32>, vector<8x8xf32> -> vector<8x8xf32>
    %cst_66 = arith.constant 1.280000e+02 : f32
    %93 = vector.broadcast %cst_66 : f32 to vector<8x8xf32>
    %94 = arith.addf %92, %93 : vector<8x8xf32>
    %c0_67 = arith.constant 0 : index
    %c1_68 = arith.constant 1 : index
    %c0_69 = arith.constant 0 : index
    %c0_70 = arith.constant 0 : index
    %95 = vector.load %arg16[%c0_67, %c1_68, %c0_69, %c0_70] : memref<1x2x8x8xf32, #tpu.memory_space<vmem>>, vector<1x1x8x8xf32>
    %96 = vector.shape_cast %95 : vector<1x1x8x8xf32> to vector<8x8xf32>
    %97 = vector.shape_cast %94 : vector<8x8xf32> to vector<1x1x8x8xf32>
    tpu.vector_store %arg16[%c0_67, %c1_68, %c0_69, %c0_70], %97 {strides = array<i32>} : memref<1x2x8x8xf32, #tpu.memory_space<vmem>>, vector<1x1x8x8xf32>,
    return
  }
  func.func @transform_0(%arg0: i32, %arg1: i32) -> (i32, i32, i32, i32) {
    %c0_i32 = arith.constant 0 : i32
    %c0_i32_0 = arith.constant 0 : i32
    %c0_i32_1 = arith.constant 0 : i32
    return %arg0, %c0_i32, %arg1, %c0_i32_0 : i32, i32, i32, i32
  }
  func.func @transform_1(%arg0: i32, %arg1: i32) -> (i32, i32) {
    %c0_i32 = arith.constant 0 : i32
    %c0_i32_0 = arith.constant 0 : i32
    %c0_i32_1 = arith.constant 0 : i32
    return %c0_i32, %c0_i32_0 : i32, i32
  }
  func.func @transform_2(%arg0: i32, %arg1: i32) -> (i32, i32) {
    %c0_i32 = arith.constant 0 : i32
    %c0_i32_0 = arith.constant 0 : i32
    %c0_i32_1 = arith.constant 0 : i32
    return %c0_i32, %c0_i32_0 : i32, i32
  }
  func.func @transform_3(%arg0: i32, %arg1: i32) -> (i32, i32) {
    %c0_i32 = arith.constant 0 : i32
    %c0_i32_0 = arith.constant 0 : i32
    %c0_i32_1 = arith.constant 0 : i32
    return %c0_i32, %c0_i32_0 : i32, i32
  }
  func.func @transform_4(%arg0: i32, %arg1: i32) -> (i32, i32) {
    %c0_i32 = arith.constant 0 : i32
    %c0_i32_0 = arith.constant 0 : i32
    %c0_i32_1 = arith.constant 0 : i32
    return %c0_i32, %c0_i32_0 : i32, i32
  }
  func.func @transform_5(%arg0: i32, %arg1: i32) -> (i32, i32) {
    %c0_i32 = arith.constant 0 : i32
    %c0_i32_0 = arith.constant 0 : i32
    %c0_i32_1 = arith.constant 0 : i32
    return %c0_i32, %c0_i32_0 : i32, i32
  }
  func.func @transform_6(%arg0: i32, %arg1: i32) -> (i32, i32) {
    %c0_i32 = arith.constant 0 : i32
    %c0_i32_0 = arith.constant 0 : i32
    %c0_i32_1 = arith.constant 0 : i32
    return %c0_i32, %c0_i32_0 : i32, i32
  }
  func.func @transform_7(%arg0: i32, %arg1: i32) -> (i32, i32) {
    %c0_i32 = arith.constant 0 : i32
    %c0_i32_0 = arith.constant 0 : i32
    %c0_i32_1 = arith.constant 0 : i32
    return %c0_i32, %c0_i32_0 : i32, i32
  }
  func.func @transform_8(%arg0: i32, %arg1: i32) -> (i32, i32) {
    %c0_i32 = arith.constant 0 : i32
    %c0_i32_0 = arith.constant 0 : i32
    %c0_i32_1 = arith.constant 0 : i32
    return %c0_i32, %c0_i32_0 : i32, i32
  }
  func.func @transform_9(%arg0: i32, %arg1: i32) -> (i32, i32) {
    %c0_i32 = arith.constant 0 : i32
    %c0_i32_0 = arith.constant 0 : i32
    %c0_i32_1 = arith.constant 0 : i32
    return %c0_i32, %c0_i32_0 : i32, i32
  }
  func.func @transform_10(%arg0: i32, %arg1: i32) -> (i32, i32) {
    %c0_i32 = arith.constant 0 : i32
    %c0_i32_0 = arith.constant 0 : i32
    %c0_i32_1 = arith.constant 0 : i32
    return %c0_i32, %c0_i32_0 : i32, i32
  }
  func.func @transform_11(%arg0: i32, %arg1: i32) -> (i32, i32) {
    %c0_i32 = arith.constant 0 : i32
    %c0_i32_0 = arith.constant 0 : i32
    %c0_i32_1 = arith.constant 0 : i32
    return %c0_i32, %c0_i32_0 : i32, i32
  }
  func.func @transform_12(%arg0: i32, %arg1: i32) -> (i32, i32) {
    %c0_i32 = arith.constant 0 : i32
    %c0_i32_0 = arith.constant 0 : i32
    %c0_i32_1 = arith.constant 0 : i32
    return %c0_i32, %c0_i32_0 : i32, i32
  }
  func.func @transform_13(%arg0: i32, %arg1: i32) -> (i32, i32, i32) {
    %c0_i32 = arith.constant 0 : i32
    %c0_i32_0 = arith.constant 0 : i32
    return %arg0, %arg1, %c0_i32 : i32, i32, i32
  }
  func.func @transform_14(%arg0: i32, %arg1: i32) -> (i32, i32, i32, i32) {
    %c0_i32 = arith.constant 0 : i32
    %c0_i32_0 = arith.constant 0 : i32
    %c0_i32_1 = arith.constant 0 : i32
    return %arg0, %c0_i32, %arg1, %c0_i32_0 : i32, i32, i32, i32
  }
}

</mosaic_0001>

<bundles_post_ra>
// kernel: diff_jpeg.3
= control target key start
LH: loop header
LB: loop body
LE: loop exit
PB: predicated region body
PF: predicated region fallthrough
CT: control target
= control target key end

     0   :  { %9 = vsyncpa [#allocation3], 0  ;;  %s1118_s0 = inlined_call_operand.vmem [shape: f32[2,16,16], index: 0, kind: input, shape index: {}]   ;;  %s1119_s1 = inlined_call_operand.vmem [shape: f32[2,2,8,8], index: 1, kind: input, shape index: {}]   ;;  %s1120_s2 = inlined_call_operand.vmem [shape: f32[16,8], index: 2, kind: input, shape index: {}]   ;;  %s1121_s3 = inlined_call_operand.vmem [shape: f32[8,16], index: 3, kind: input, shape index: {}]   ;;  %s1122_s4 = inlined_call_operand.hbm [shape: f32[2,3,16,16], index: 4, kind: output, shape index: {}]  }
   0x1   :  { %11 = vsyncpa [#allocation3 + $0x1], 0  ;;  %s974_s15 = smov 0   ;;  %s976_s16 = smov 0  }
   0x2   :  { %s978_s17 = smov 0   ;;  %s980_s18 = smov 0  }
   0x3   :  { %s982_s19 = smov 0   ;;  %s984_s20 = smov 0  }
   0x4 LB: > { %s746_s21 = sadd.s32 4294967295, %s944_s20   ;;  %s747_s22 = sadd.s32 4294967294, %s944_s20   ;;  %s944_s20 = sphi %s984_s20, %s17_s20   ;;  %s940_s19 = sphi %s982_s19, %s1129_s19   ;;  %s936_s18 = sphi %s980_s18, %s1128_s18   ;;  %s932_s17 = sphi %s978_s17, %s1127_s17   ;;  %s928_s16 = sphi %s976_s16, %s1126_s16   ;;  %s924_s15 = sphi %s974_s15, %s1125_s15  }
   0x5   : > { %s29_s23 = sadd.s32 1, %s940_s19  ;;  %s136_s24 = sadd.s32 1, %s932_s17 }
   0x6   : > { %p31_p0 = scmp.ge.s32.totalorder %s29_s23, 2  ;;  %p146_p1 = scmp.ne.s32.totalorder %s932_s17, %s928_s16 }
   0x7   : > { %p147_p2 = scmp.eq.s32.totalorder %s746_s21, 1  ;;  %p152_p3 = scmp.ne.s32.totalorder %s928_s16, %s924_s15 }
   0x8   : > { %s1131_s23 = smov (%p31_p0, %s29_s23), 0  ;;  %p153_p5 = scmp.eq.s32.totalorder %s747_s22, 1 }
   0x9   : > { %p1014_p4 = por %p147_p2, %p146_p1  ;;  %s131_s26 = ssub.s32 %s940_s19, %s1131_s23 }
   0xa   : > { %p750_p6 = scmp.ge.s32.totalorder %s944_s20, 1  ;;  %p134_p7 = scmp.eq.s32.totalorder %s131_s26, 0 }
   0xb   : > { %p1021_p8 = por %p153_p5, %p152_p3  ;;  %p201_p9 = scmp.lt.s32.totalorder %s944_s20, 3 }
   0xc   : > { %s1027_s28 = scalar_select %p134_p7, %s932_s17, %s136_s24  }
   0xd   : > { %p202_p10 = pnand %p750_p6, %p201_p9 }
   0xe   : > { %p240_p11 = scmp.lt.s32.totalorder (!%p202_p10), %s936_s18, 1  ;;  %s236_s24 = sand.u32 (!%p202_p10), 1, %s928_s16  }
   0xf   : > { %205 = sbr.rel (%p202_p10) target bundleno = 448 (0x1c0), region = 36  ;;  %s1073_s8 = scalar_lea.sflag (!%p202_p10), [#allocation3], %s236_s24 }
  0x10   : > { %s809_s26 = smul.u32 (!%p202_p10), 48, %s236_s24  ;;  %s946_s10 = smov (!%p202_p10), [#allocation2]  }
  0x11   : > { %s810_s29 = smul.u32 (!%p202_p10), 768, %s936_s18  ;;  %s872_s11 = sshll.u32 (!%p202_p10), %s946_s10, 4  ;;  %s873_s11 = int_to_ptr.vmem [resolvable:$false] %s872_s11 }
  0x12   : > { %s238_s30 = scalar_lea.vmem (!%p202_p10), [#allocation2], %s809_s26  ;;  %s874_s12 = scalar_lea.vmem (!%p202_p10), %s873_s11, 1536 }
  0x14   : > { %v258_v0 = vld [vmem:[%s1120_s2] sm:$0xff]  ;;  %vm266_vm0 = vcmask 64512   ;;  %s241_s5 = scalar_select %p240_p11, %s936_s18, 1  ;;  %v259_v2 = vld [vmem:[%s1120_s2 + $0x8] sm:$0xff]  ;;  %vm612_vm1 = vcmask 130048  }
  0x15   : > { %791 = vmatprep.mubr.msk.f32.mxu0 %vm266_vm0, %v258_v0  ;;  %v260_v4 = vld [vmem:[%s1121_s3] sm:$0xff]  ;;  %s1063_s18 = scalar_lea.hbm %s1122_s4, %s810_s29 }
  0x16   : > { %s775_s6 = sshll.u32 %s241_s5, 4  ;;  %794 = vmatprep.subr.mxu1 %v260_v4  ;;  %s649_s5 = sshll.u32 %s238_s30, 4  ;;  %s1065_s5 = int_to_ptr.vmem [resolvable:$true] %s649_s5 }
  0x17   : > { %s256_s9 = scalar_lea.vmem %s1119_s1, %s775_s6  ;;  %795 = vmatpush3.msra.mxu1 %v260_v4  ;;  %s247_s22 = scalar_lea.vmem %s1118_s0, %s775_s6 }
  0x18   : > { %v263_v1 = vld [vmem:[%s256_s9] sm:$0xff]  ;;  %v755_v3 = vld [vmem:[%s256_s9 + $0x8] sm:$0xff]  ;;  %804 = vmatprep.subr.mxu1 %v260_v4  ;;  %s868_s9 = scalar_lea.vmem %s1065_s5, 768  ;;  %p875_p1 = scmp.lt.s32.totalorder %s1065_s5, %s873_s11 }
  0x19   : > { %789 = vmatprep.subr.mxu0 %v263_v1  ;;  %v262_v11 = vld [vmem:[%s247_s22 + $0x8] sm:$0xff]  ;;  %v261_v15 = vld [vmem:[%s247_s22] sm:$0xff]  ;;  %p869_p12 = scmp.ne.s32.totalorder %s1065_s5, %s868_s9  ;;  %p876_p2 = scmp.lt.s32.totalorder %s874_s12, %s868_s9 }
  0x1a   : > { %790 = vmatpush3.msra.mxu0 %v263_v1 }
  0x1b   : > { %792 = vmatmul.mubr.msk.f32.vlgmr.msra.gmra.mxu0 %vm266_vm0, %v259_v2  ;;  %799 = vmatprep.subr.mxu0 %v755_v3  ;;  %p870_p13 = pnand %p869_p12, %p1014_p4  ;;  %p877_p3 = por %p876_p2, %p875_p1 }
  0x1c   : > { %800 = vmatpush3.msra.mxu0 %v755_v3  ;;  %801 = vmatprep.mubr.msk.f32.mxu0 %vm266_vm0, %v258_v0 }
  0x1d   : > { %p871_p0 = pneg %p870_p13 }
  0x1f   : > { %802 = vmatmul.mubr.msk.f32.vlgmr.msra.gmra.mxu0 %vm266_vm0, %v259_v2  ;;  %p878_p5 = pnand %p877_p3, %p871_p0 }
  0xdb   : > { %v793_v5 = vpop.f32.mrf.mxu0 }
  0xdd   : > { %v339_v6 = vpop.f32.mrf.mxu0 }
  0xde   : > { %796 = vmatprep.mubr.msk.f32.mxu1 %vm266_vm0, %v339_v6 }
  0xdf   : > { %797 = vmatmul.mubr.msk.f32.vlgmr.msra.gmra.mxu1 %vm266_vm0, %v793_v5  ;;  %v803_v7 = vpop.f32.mrf.mxu0 }
  0xe0   : > { %805 = vmatpush3.msra.mxu1 %v260_v4 }
  0xe1   : > { %v497_v8 = vpop.f32.mrf.mxu0 }
  0xe2   : > { %806 = vmatprep.mubr.msk.f32.mxu1 %vm266_vm0, %v497_v8 }
  0xe3   : > { %807 = vmatmul.mubr.msk.f32.vlgmr.msra.gmra.mxu1 %vm266_vm0, %v803_v7 }
 0x19f   : > { %v798_v9 = vpop.f32.mrf.mxu1 }
 0x1a0   : > { %v761_v10 = vadd.f32 -128.0, %v798_v9 }
 0x1a1   : > { %v420_v12 = vpop.f32.mrf.mxu1 }
 0x1a2   : > { %v602_v13 = vmul.f32 1.772, %v761_v10  ;;  %v760_v14 = vadd.f32 -128.0, %v420_v12  ;;  %v594_v16 = vmul.f32 0.344136, %v761_v10 }
 0x1a3   : > { %v808_v17 = vpop.f32.mrf.mxu1 }
 0x1a4   : > { %v604_v18 = vadd.f32 %v602_v13, %v262_v11  ;;  %v593_v19 = vmul.f32 0.344136, %v760_v14  ;;  %v601_v20 = vmul.f32 1.772, %v760_v14  ;;  %v767_v21 = vadd.f32 -128.0, %v808_v17 }
 0x1a5   : > { %v578_v22 = vpop.f32.mrf.mxu1  ;;  %v596_v26 = vsub.f32 %v262_v11, %v594_v16 }
 0x1a6   : > { %v625_v23 = vmax.f32 %v604_v18, 0.0  ;;  %v603_v24 = vadd.f32 %v601_v20, %v261_v15  ;;  %v766_v25 = vadd.f32 -128.0, %v578_v22  ;;  %v595_v27 = vsub.f32 %v261_v15, %v593_v19 }
 0x1a7   : > { %v590_v28 = vmul.f32 1.402, %v767_v21  ;;  %v598_v29 = vmul.f32 0.714136, %v767_v21 }
 0x1a8   : > { %v627_v30 = vmin.f32 %v625_v23, 255.0  ;;  %v624_v31 = vmax.f32 %v603_v24, 0.0  ;;  %v589_v32 = vmul.f32 1.402, %v766_v25  ;;  %v597_v33 = vmul.f32 0.714136, %v766_v25 }
 0x1a9   : > { %v592_v34 = vadd.f32 %v590_v28, %v262_v11  ;;  %v600_v35 = vsub.f32 %v596_v26, %v598_v29 }
 0x1aa   : > { %v629_v36 = vmul.f32 0.003921569, %v627_v30  ;;  %v626_v37 = vmin.f32 %v624_v31, 255.0  ;;  %v591_v38 = vadd.f32 %v589_v32, %v261_v15  ;;  %v599_v39 = vsub.f32 %v595_v27, %v597_v33 }
 0x1ab   : > { %v606_v40 = vmax.f32 %v592_v34, 0.0  ;;  %v616_v41 = vmax.f32 %v600_v35, 0.0 }
 0x1ac   : > { %771 = vst.msk [vmem:[%s238_s30 + $0x28] sm:$0xff] %vm612_vm1, %v629_v36  ;;  %v628_v42 = vmul.f32 0.003921569, %v626_v37  ;;  %v605_v43 = vmax.f32 %v591_v38, 0.0  ;;  %v615_v44 = vmax.f32 %v599_v39, 0.0 }
 0x1ad   : > { %v608_v45 = vmin.f32 %v606_v40, 255.0  ;;  %v618_v46 = vmin.f32 %v616_v41, 255.0 }
 0x1ae   : > { %770 = vst.msk [vmem:[%s238_s30 + $0x20] sm:$0xff] %vm612_vm1, %v628_v42  ;;  %v607_v47 = vmin.f32 %v605_v43, 255.0  ;;  %v617_v48 = vmin.f32 %v615_v44, 255.0 }
 0x1af   : > { %v611_v49 = vmul.f32 0.003921569, %v608_v45  ;;  %v620_v50 = vmul.f32 0.003921569, %v618_v46 }
 0x1b0   : > { %v610_v51 = vmul.f32 0.003921569, %v607_v47  ;;  %v619_v52 = vmul.f32 0.003921569, %v617_v48 }
 0x1b1   : > { %614 = vst.msk [vmem:[%s238_s30 + $0x8] sm:$0xff] %vm612_vm1, %v611_v49  ;;  %769 = vst.msk [vmem:[%s238_s30 + $0x18] sm:$0xff] %vm612_vm1, %v620_v50 }
 0x1b2   : > { %613 = vst.msk [vmem:[%s238_s30] sm:$0xff] %vm612_vm1, %v610_v51  ;;  %768 = vst.msk [vmem:[%s238_s30 + $0x10] sm:$0xff] %vm612_vm1, %v619_v52 }
 0x1b3   : > { %881 = shalt.err (!%p878_p5)
}
 0x1b4   : > { %s882_s13 = scalar_lea.hbm %s1063_s18, 768  ;;  %s886_s22 = scalar_lea.hbm %s1122_s4, 1536 }
 0x1b5   : > { %p883_p6 = scmp.ne.s32.totalorder %s1063_s18, %s882_s13  ;;  %p887_p10 = scmp.lt.s32.totalorder %s1063_s18, %s1122_s4 }
 0x1b6   : > { %p888_p11 = scmp.lt.s32.totalorder %s886_s22, %s882_s13 }
 0x1b7   : > { %p884_p7 = pnand %p883_p6, %p1014_p4 }
 0x1b8   : > { %p889_p12 = por %p888_p11, %p887_p10 }
 0x1b9   : > { %p885_p9 = pneg %p884_p7 }
 0x1bb   : > { %p890_p13 = pnand %p889_p12, %p885_p9 }
 0x1bd   : > { %893 = shalt.err (!%p890_p13)
}
 0x1be   : > { %s947_s29 = smov 128   ;;  %s948_s30 = smov 8  }
 0x1bf   : > { %811 = dma.vmem_to_hbm [thread:$0]  (%p1014_p4), %s1065_s5, 768, %s1063_s18, %s1073_s8, %s947_s29, %s947_s29, %s948_s30  }
 0x1c0 PF: > { %p817_p0 = scmp.ge.s32.totalorder %s944_s20, 2  ;;  %s664_s6 = sand.u32 1, %s924_s15  }
 0x1c1   : > { %s665_s7 = scalar_lea.sflag [#allocation3], %s664_s6 }
 0x1c2   : > { %p814_p1 = pnand %p817_p0, %p1021_p8 }
 0x1c4   : > { %p815_p2 = pneg %p814_p1 }
 0x1c6   : > { %919 = dma.done.wait (%p815_p2), %s665_s7, 768  }
 0x1c7   : > { %921 = vsyncadd (%p815_p2), %s665_s7, 4294966528  ;;  %s17_s20 = sadd.s32 1, %s944_s20   ;;  %s1125_s15 = smov %s928_s16 }
 0x1c8   : > { %p14_p3 = scmp.ge.s32.totalorder %s17_s20, 4   ;;  %s1126_s16 = smov %s932_s17 }
 0x1c9   : > { %s1127_s17 = smov %s1027_s28  ;;  %s1128_s18 = smov %s940_s19 }
 0x1ca   : > { %s1129_s19 = smov %s1131_s23  ;;  %16 = sbr.rel (!%p14_p3) target bundleno = 4 (0x4), region = 77 }
 0x1cf   :  { %670 = vsyncpa [#allocation3], 1 }
 0x1d0   :  { %672 = vsyncpa [#allocation3 + $0x1], 1 }

// kernel: diff_jpeg.2
= control target key start
LH: loop header
LB: loop body
LE: loop exit
PB: predicated region body
PF: predicated region fallthrough
CT: control target
= control target key end

     0   :  { %s3144_s0 = inlined_call_operand.hbm [shape: f32[2,3,16,16], index: 0, kind: input, shape index: {}]   ;;  %s3145_s1 = inlined_call_operand.hbm [shape: f32[16,16], index: 1, kind: input, shape index: {}, may-alias: {1,6}]   ;;  %s3146_s2 = inlined_call_operand.hbm [shape: f32[16,16], index: 2, kind: input, shape index: {}, may-alias: {2,5}]   ;;  %s3147_s3 = inlined_call_operand.hbm [shape: f32[8,16], index: 3, kind: input, shape index: {}]   ;;  %s3148_s4 = inlined_call_operand.hbm [shape: f32[8,8], index: 4, kind: input, shape index: {}]   ;;  %s3149_s5 = inlined_call_operand.hbm [shape: f32[16,16], index: 5, kind: input, shape index: {}, may-alias: {2,5}]   ;;  %s3150_s6 = inlined_call_operand.hbm [shape: f32[16,16], index: 6, kind: input, shape index: {}, may-alias: {1,6}]   ;;  %s3151_s7 = inlined_call_operand.hbm [shape: f32[16,8], index: 7, kind: input, shape index: {}]   ;;  %s3152_s8 = inlined_call_operand.hbm [shape: f32[8,8], index: 8, kind: input, shape index: {}]   ;;  %s3153_s9 = inlined_call_operand.hbm [shape: f32[16,16], index: 9, kind: input, shape index: {}]   ;;  %s3154_s10 = inlined_call_operand.vmem [shape: f32[16,16], index: 10, kind: input, shape index: {}]   ;;  %s3155_s11 = inlined_call_operand.hbm [shape: f32[8,8], index: 11, kind: input, shape index: {}]   ;;  %s3156_s12 = inlined_call_operand.hbm [shape: f32[8,8], index: 12, kind: input, shape index: {}]   ;;  %s3157_s13 = inlined_call_operand.vmem [shape: f32[2,16,16], index: 13, kind: output, shape index: {0}]   ;;  %s3158_s14 = inlined_call_operand.vmem [shape: f32[2,2,8,8], index: 14, kind: output, shape index: {1}]  }
   0x1   :  { %3166 = sst [smem:[#allocation29_spill]] %s3145_s1 }
   0x2   :  { %3167 = sst [smem:[#allocation30_spill]] %s3146_s2 }
   0x3   :  { %3168 = sst [smem:[#allocation31_spill]] %s3147_s3 }
   0x4   :  { %3169 = sst [smem:[#allocation32_spill]] %s3148_s4 }
   0x5   :  { %3170 = sst [smem:[#allocation33_spill]] %s3154_s10 }
   0x6   :  { %3171 = sst [smem:[#allocation34_spill]] %s3157_s13 }
   0x7   :  { %3172 = sst [smem:[#allocation35_spill]] %s3158_s14 }
   0x8   :  { %20 = vsyncpa [#allocation3], 0 }
   0x9   :  { %22 = vsyncpa [#allocation3 + $0x1], 0 }
   0xa   :  { %23 = vsyncpa [#allocation5], 0 }
   0xb   :  { %24 = vsyncpa [#allocation8], 0 }
   0xc   :  { %25 = vsyncpa [#allocation11], 0 }
   0xd   :  { %26 = vsyncpa [#allocation14], 0 }
   0xe   :  { %27 = vsyncpa [#allocation17], 0 }
   0xf   :  { %28 = vsyncpa [#allocation20], 0  ;;  %s2793_s29 = smov 0   ;;  %s2795_s30 = smov 0  }
  0x10   :  { %s2797_s15 = smov 0   ;;  %s2799_s16 = smov 0  }
  0x11   :  { %s2801_s17 = smov 0   ;;  %s2803_s18 = smov 0  }
  0x12 LB: > { %3173 = sst [smem:[#allocation28_spill]] %s2692_s16  ;;  %s1936_s19 = sadd.s32 4294967295, %s2700_s18   ;;  %s2700_s18 = sphi %s2803_s18, %s34_s18   ;;  %s2696_s17 = sphi %s2801_s17, %s3197_s17   ;;  %s2692_s16 = sphi %s2799_s16, %s3196_s16   ;;  %s2688_s15 = sphi %s2797_s15, %s3195_s15   ;;  %s2684_s30 = sphi %s2795_s30, %s3194_s30   ;;  %s2680_s29 = sphi %s2793_s29, %s3193_s29  }
  0x13   : > { %p1938_p0 = scmp.ge.s32.totalorder %s2700_s18, 1  ;;  %p2825_p1 = scmp.eq.s32.totalorder %s1936_s19, 0 }
  0x14   : > { %p387_p2 = scmp.lt.s32.totalorder %s2700_s18, 3  ;;  %s2702_s22 = smov [#allocation4]  }
  0x15   : > { %s3174_s20 = scalar_select %p2825_p1, 1, 0 }
  0x16   : > { %p2830_p3 = pnand %p1938_p0, %p387_p2  ;;  %s399_s23 = sshll.u32 %s2702_s22, 4  ;;  %s400_s23 = int_to_ptr.vmem [resolvable:$true] %s399_s23 }
  0x17   : > { %s2703_s25 = smov [#allocation7]   ;;  %s2704_s27 = smov [#allocation10]  }
  0x18   : > { %s3175_s21 = scalar_select %p2830_p3, 1, 0 }
  0x19   : > { %p2188_p4 = pneg %p2830_p3  ;;  %s426_s26 = sshll.u32 %s2703_s25, 4  ;;  %s427_s26 = int_to_ptr.vmem [resolvable:$true] %s426_s26 }
  0x1a   : > { %s447_s28 = sshll.u32 %s2704_s27, 4  ;;  %s2323_s22 = scalar_lea.vmem %s400_s23, 256  ;;  %s448_s28 = int_to_ptr.vmem [resolvable:$true] %s447_s28 }
  0x1b   : > { %p2838_p5 = pnand %p2188_p4, %p2825_p1  ;;  %p2324_p7 = scmp.ne.s32.totalorder %s400_s23, %s2323_s22 }
  0x1c   : > { %p2331_p10 = scmp.lt.s32.totalorder %s400_s23, %s400_s23  ;;  %p2332_p11 = scmp.lt.s32.totalorder %s2323_s22, %s2323_s22 }
  0x1d   : > { %p2844_p6 = pneg %p2838_p5 }
  0x1e   : > { %p2333_p12 = por %p2332_p11, %p2331_p10 }
  0x1f   : > { %p2326_p8 = pnand %p2324_p7, %p2844_p6 }
  0x21   : > { %p2327_p9 = pneg %p2326_p8 }
  0x23   : > { %p2334_p13 = pnand %p2333_p12, %p2327_p9 }
  0x25   : > { %2337 = shalt.err (!%p2334_p13)
}
  0x26   : > { %s3164_s25 = smov 128   ;;  %s3165_s27 = smov 8  }
  0x27   : > { %s3178_s1 = sld [smem:[#allocation29_spill]]  ;;  %s2349_s16 = scalar_lea.vmem %s427_s26, 128 }
  0x28   : > { %p2350_p0 = scmp.ne.s32.totalorder %s427_s26, %s2349_s16  ;;  %p2357_p7 = scmp.lt.s32.totalorder %s427_s26, %s427_s26 }
  0x29   : > { %p2358_p8 = scmp.lt.s32.totalorder %s2349_s16, %s2349_s16 }
  0x2a   : > { %p2352_p2 = pnand %p2350_p0, %p2844_p6 }
  0x2b   : > { %p2359_p9 = por %p2358_p8, %p2357_p7 }
  0x2c   : > { %p2353_p4 = pneg %p2352_p2 }
  0x2d   : > { %2191 = dma.hbm_to_vmem [thread:$0]  (!%p2838_p5), %s3178_s1, 256, %s400_s23, [#allocation5], %s3164_s25, %s3164_s25, %s3165_s27  }
  0x2e   : > { %p2360_p10 = pnand %p2359_p9, %p2353_p4 }
  0x30   : > { %2363 = shalt.err (!%p2360_p10)
}
  0x31   : > { %s3179_s3 = sld [smem:[#allocation31_spill]]  ;;  %s2375_s13 = scalar_lea.vmem %s448_s28, 256 }
  0x32   : > { %p2376_p11 = scmp.ne.s32.totalorder %s448_s28, %s2375_s13  ;;  %p2383_p0 = scmp.lt.s32.totalorder %s448_s28, %s448_s28 }
  0x33   : > { %p2384_p2 = scmp.lt.s32.totalorder %s2375_s13, %s2375_s13 }
  0x34   : > { %p2378_p12 = pnand %p2376_p11, %p2844_p6 }
  0x35   : > { %p2385_p3 = por %p2384_p2, %p2383_p0 }
  0x36   : > { %p2379_p13 = pneg %p2378_p12 }
  0x37   : > { %2197 = dma.hbm_to_vmem [thread:$0]  (!%p2838_p5), %s3179_s3, 128, %s427_s26, [#allocation8]  }
  0x38   : > { %p2386_p1 = pnand %p2385_p3, %p2379_p13 }
  0x3a   : > { %2389 = shalt.err (!%p2386_p1)
}
  0x3b   : > { %2203 = dma.hbm_to_vmem [thread:$0]  (!%p2838_p5), %s3149_s5, 256, %s448_s28, [#allocation11], %s3164_s25, %s3164_s25, %s3165_s27  }
  0x3c   : > { %s2707_s16 = smov [#allocation13]   ;;  %s2708_s26 = smov [#allocation16]  }
  0x3d   : > { %s473_s23 = sshll.u32 %s2707_s16, 4  ;;  %s497_s22 = sshll.u32 %s2708_s26, 4  ;;  %s474_s23 = int_to_ptr.vmem [resolvable:$true] %s473_s23  ;;  %s498_s22 = int_to_ptr.vmem [resolvable:$true] %s497_s22 }
  0x3e   : > { %s2401_s1 = scalar_lea.vmem %s474_s23, 256  ;;  %p2409_p7 = scmp.lt.s32.totalorder %s474_s23, %s474_s23 }
  0x3f   : > { %p2402_p4 = scmp.ne.s32.totalorder %s474_s23, %s2401_s1  ;;  %p2410_p8 = scmp.lt.s32.totalorder %s2401_s1, %s2401_s1 }
  0x41   : > { %p2404_p3 = pnand %p2402_p4, %p2844_p6  ;;  %p2411_p9 = por %p2410_p8, %p2409_p7 }
  0x43   : > { %p2405_p1 = pneg %p2404_p3 }
  0x45   : > { %p2412_p10 = pnand %p2411_p9, %p2405_p1 }
  0x47   : > { %2415 = shalt.err (!%p2412_p10)
}
  0x48   : > { %2209 = dma.hbm_to_vmem [thread:$0]  (!%p2838_p5), %s3151_s7, 256, %s474_s23, [#allocation14], %s3164_s25, %s3164_s25, %s3165_s27  }
  0x49   : > { %s2427_s14 = scalar_lea.vmem %s498_s22, 256  ;;  %p2435_p0 = scmp.lt.s32.totalorder %s498_s22, %s498_s22 }
  0x4a   : > { %p2428_p11 = scmp.ne.s32.totalorder %s498_s22, %s2427_s14  ;;  %p2436_p2 = scmp.lt.s32.totalorder %s2427_s14, %s2427_s14 }
  0x4c   : > { %p2430_p12 = pnand %p2428_p11, %p2844_p6  ;;  %p2437_p4 = por %p2436_p2, %p2435_p0 }
  0x4e   : > { %p2431_p13 = pneg %p2430_p12 }
  0x50   : > { %p2438_p3 = pnand %p2437_p4, %p2431_p13 }
  0x52   : > { %2441 = shalt.err (!%p2438_p3)
}
  0x53   : > { %2215 = dma.hbm_to_vmem [thread:$0]  (!%p2838_p5), %s3153_s9, 256, %s498_s22, [#allocation17], %s3164_s25, %s3164_s25, %s3165_s27  }
  0x54   : > { %s2709_s16 = smov [#allocation6]   ;;  %s2710_s26 = smov [#allocation9]  }
  0x55   : > { %s412_s23 = sshll.u32 %s2709_s16, 4  ;;  %s437_s28 = sshll.u32 %s2710_s26, 4  ;;  %s413_s23 = int_to_ptr.vmem [resolvable:$true] %s412_s23  ;;  %s438_s28 = int_to_ptr.vmem [resolvable:$true] %s437_s28 }
  0x56   : > { %s2453_s13 = scalar_lea.vmem %s413_s23, 256  ;;  %p2461_p9 = scmp.lt.s32.totalorder %s413_s23, %s413_s23 }
  0x57   : > { %p2454_p1 = scmp.ne.s32.totalorder %s413_s23, %s2453_s13  ;;  %p2462_p10 = scmp.lt.s32.totalorder %s2453_s13, %s2453_s13 }
  0x59   : > { %p2456_p7 = pnand %p2454_p1, %p2844_p6  ;;  %p2463_p11 = por %p2462_p10, %p2461_p9 }
  0x5b   : > { %p2457_p8 = pneg %p2456_p7 }
  0x5d   : > { %p2464_p12 = pnand %p2463_p11, %p2457_p8 }
  0x5f   : > { %2467 = shalt.err (!%p2464_p12)
}
  0x60   : > { %s3180_s2 = sld [smem:[#allocation30_spill]]  ;;  %s2479_s1 = scalar_lea.vmem %s438_s28, 128 }
  0x61   : > { %p2480_p13 = scmp.ne.s32.totalorder %s438_s28, %s2479_s1  ;;  %p2487_p4 = scmp.lt.s32.totalorder %s438_s28, %s438_s28 }
  0x62   : > { %p2488_p3 = scmp.lt.s32.totalorder %s2479_s1, %s2479_s1 }
  0x63   : > { %p2482_p0 = pnand %p2480_p13, %p2844_p6 }
  0x64   : > { %p2489_p1 = por %p2488_p3, %p2487_p4 }
  0x65   : > { %p2483_p2 = pneg %p2482_p0 }
  0x66   : > { %2194 = dma.hbm_to_vmem [thread:$0]  (!%p2838_p5), %s3180_s2, 256, %s413_s23, [#allocation5], %s3164_s25, %s3164_s25, %s3165_s27  }
  0x67   : > { %p2490_p7 = pnand %p2489_p1, %p2483_p2 }
  0x69   : > { %2493 = shalt.err (!%p2490_p7)
}
  0x6a   : > { %s3181_s4 = sld [smem:[#allocation32_spill]]  ;;  %s2711_s26 = smov [#allocation12]  }
  0x6b   : > { %s460_s23 = sshll.u32 %s2711_s26, 4  ;;  %s2712_s13 = smov [#allocation15]   ;;  %s461_s23 = int_to_ptr.vmem [resolvable:$true] %s460_s23 }
  0x6c   : > { %s487_s22 = sshll.u32 %s2712_s13, 4  ;;  %s2505_s14 = scalar_lea.vmem %s461_s23, 256  ;;  %s488_s22 = int_to_ptr.vmem [resolvable:$true] %s487_s22 }
  0x6d   : > { %p2506_p8 = scmp.ne.s32.totalorder %s461_s23, %s2505_s14  ;;  %p2513_p11 = scmp.lt.s32.totalorder %s461_s23, %s461_s23 }
  0x6e   : > { %p2514_p12 = scmp.lt.s32.totalorder %s2505_s14, %s2505_s14 }
  0x6f   : > { %p2508_p9 = pnand %p2506_p8, %p2844_p6 }
  0x70   : > { %2200 = dma.hbm_to_vmem [thread:$0]  (!%p2838_p5), %s3181_s4, 128, %s438_s28, [#allocation8]  }
  0x71   : > { %p2509_p10 = pneg %p2508_p9  ;;  %p2515_p13 = por %p2514_p12, %p2513_p11 }
  0x73   : > { %p2516_p0 = pnand %p2515_p13, %p2509_p10 }
  0x75   : > { %2519 = shalt.err (!%p2516_p0)
}
  0x76   : > { %2206 = dma.hbm_to_vmem [thread:$0]  (!%p2838_p5), %s3150_s6, 256, %s461_s23, [#allocation11], %s3164_s25, %s3164_s25, %s3165_s27  }
  0x77   : > { %s2531_s10 = scalar_lea.vmem %s488_s22, 128  ;;  %p2539_p1 = scmp.lt.s32.totalorder %s488_s22, %s488_s22 }
  0x78   : > { %p2532_p2 = scmp.ne.s32.totalorder %s488_s22, %s2531_s10  ;;  %p2540_p7 = scmp.lt.s32.totalorder %s2531_s10, %s2531_s10 }
  0x7a   : > { %p2534_p4 = pnand %p2532_p2, %p2844_p6  ;;  %p2541_p8 = por %p2540_p7, %p2539_p1 }
  0x7c   : > { %p2535_p3 = pneg %p2534_p4 }
  0x7e   : > { %p2542_p9 = pnand %p2541_p8, %p2535_p3 }
  0x80   : > { %2545 = shalt.err (!%p2542_p9)
}
  0x81   : > { %2212 = dma.hbm_to_vmem [thread:$0]  (!%p2838_p5), %s3152_s8, 128, %s488_s22, [#allocation14]  }
  0x82   : > { %s2713_s13 = smov [#allocation18]   ;;  %s2714_s14 = smov [#allocation19]  }
  0x83   : > { %s514_s23 = sshll.u32 %s2713_s13, 4  ;;  %s525_s28 = sshll.u32 %s2714_s14, 4  ;;  %s515_s23 = int_to_ptr.vmem [resolvable:$true] %s514_s23  ;;  %s526_s28 = int_to_ptr.vmem [resolvable:$true] %s525_s28 }
  0x84   : > { %s2557_s1 = scalar_lea.vmem %s515_s23, 128  ;;  %p2565_p13 = scmp.lt.s32.totalorder %s515_s23, %s515_s23 }
  0x85   : > { %p2558_p10 = scmp.ne.s32.totalorder %s515_s23, %s2557_s1  ;;  %p2566_p0 = scmp.lt.s32.totalorder %s2557_s1, %s2557_s1 }
  0x87   : > { %p2560_p11 = pnand %p2558_p10, %p2844_p6  ;;  %p2567_p2 = por %p2566_p0, %p2565_p13 }
  0x89   : > { %p2561_p12 = pneg %p2560_p11 }
  0x8b   : > { %p2568_p4 = pnand %p2567_p2, %p2561_p12 }
  0x8d   : > { %2571 = shalt.err (!%p2568_p4)
}
  0x8e   : > { %2218 = dma.hbm_to_vmem [thread:$0]  (!%p2838_p5), %s3155_s11, 128, %s515_s23, [#allocation17]  }
  0x8f   : > { %s2583_s22 = scalar_lea.vmem %s526_s28, 128  ;;  %p2591_p8 = scmp.lt.s32.totalorder %s526_s28, %s526_s28 }
  0x90   : > { %p2584_p3 = scmp.ne.s32.totalorder %s526_s28, %s2583_s22  ;;  %p2592_p9 = scmp.lt.s32.totalorder %s2583_s22, %s2583_s22 }
  0x92   : > { %p2586_p1 = pnand %p2584_p3, %p2844_p6  ;;  %p2593_p10 = por %p2592_p9, %p2591_p8 }
  0x94   : > { %p2587_p7 = pneg %p2586_p1 }
  0x96   : > { %p2594_p11 = pnand %p2593_p10, %p2587_p7 }
  0x98   : > { %2597 = shalt.err (!%p2594_p11)
}
  0x99   : > { %2221 = dma.hbm_to_vmem [thread:$0]  (!%p2838_p5), %s3156_s12, 128, %s526_s28, [#allocation20]  }
  0x9a   : > { %s46_s19 = sadd.s32 1, %s2696_s17  ;;  %s55_s24 = sadd.s32 1, %s2688_s15 }
  0x9b   : > { %p48_p6 = scmp.ge.s32.totalorder %s46_s19, 2  ;;  %p62_p12 = scmp.ne.s32.totalorder %s2688_s15, %s2684_s30 }
  0x9c   : > { %p63_p13 = scmp.eq.s32.totalorder %s2700_s18, 0  ;;  %p68_p2 = scmp.ne.s32.totalorder %s2684_s30, %s2680_s29 }
  0x9d   : > { %s3199_s19 = smov (%p48_p6, %s46_s19), 0  ;;  %p2237_p4 = scmp.lt.s32.totalorder %s2700_s18, 2 }
  0x9e   : > { %p64_p0 = por %p63_p13, %p62_p12  ;;  %s50_s23 = ssub.s32 %s2696_s17, %s3199_s19 }
  0x9f   : > { %p53_p3 = scmp.eq.s32.totalorder %s50_s23, 0  ;;  %p3182_p1 = scmp.ne.s32.totalorder %s3174_s20, 0 }
  0xa0   : > { %s536_s1 = sand.u32 1, %s2688_s15   ;;  %s2108_s28 = smul.u32 768, %s2696_s17 }
  0xa1   : > { %p2957_p7 = por %p3182_p1, %p68_p2  ;;  %s2107_s16 = smul.u32 48, %s536_s1 }
  0xa2   : > { %s2964_s10 = scalar_select %p53_p3, %s2688_s15, %s55_s24  }
  0xa3   : > { %p2966_p5 = pnand %p2237_p4, %p64_p0  ;;  %s548_s29 = scalar_lea.hbm %s3144_s0, %s2108_s28 }
  0xa4   : > { %s540_s23 = scalar_lea.vmem [#allocation2], %s2107_s16  ;;  %s537_s27 = scalar_lea.sflag [#allocation3], %s536_s1 }
  0xa5   : > { %s549_s25 = sshll.u32 %s540_s23, 4  ;;  %p2600_p8 = pneg %p2966_p5  ;;  %s550_s25 = int_to_ptr.vmem [resolvable:$true] %s549_s25 }
  0xa6   : > { %s2611_s2 = scalar_lea.vmem %s550_s25, 768  ;;  %s2715_s24 = smov [#allocation2]  }
  0xa7   : > { %p2612_p9 = scmp.ne.s32.totalorder %s550_s25, %s2611_s2  ;;  %s2616_s3 = sshll.u32 %s2715_s24, 4  ;;  %s2617_s3 = int_to_ptr.vmem [resolvable:$false] %s2616_s3 }
  0xa8   : > { %s2618_s4 = scalar_lea.vmem %s2617_s3, 1536  ;;  %p2619_p6 = scmp.lt.s32.totalorder %s550_s25, %s2617_s3 }
  0xa9   : > { %p2614_p10 = pnand %p2612_p9, %p2600_p8  ;;  %p2620_p12 = scmp.lt.s32.totalorder %s2618_s4, %s2611_s2 }
  0xab   : > { %p2615_p11 = pneg %p2614_p10  ;;  %p2621_p13 = por %p2620_p12, %p2619_p6 }
  0xad   : > { %p2622_p0 = pnand %p2621_p13, %p2615_p11 }
  0xaf   : > { %2625 = shalt.err (!%p2622_p0)
}
  0xb0   : > { %s3185_s28 = smov 8   ;;  %s3186_s16 = smov 128  }
  0xb1   : > { %2225 = dma.hbm_to_vmem [thread:$0]  (!%p2966_p5), %s548_s29, 768, %s550_s25, %s537_s27, %s3186_s16, %s3186_s16, %s3185_s28  }
  0xb2   : > { %p3187_p2 = scmp.ne.s32.totalorder %s3175_s21, 0 }
  0xb3   : > { %s563_s1 = sand.u32 (!%p3187_p2), 1, %s2684_s30  }
  0xb4   : > { %561 = sbr.rel (%p3187_p2) target bundleno = 1844 (0x734), region = 72  ;;  %s564_s13 = scalar_lea.sflag (!%p3187_p2), [#allocation3], %s563_s1 }
  0xb5   : > { %s2109_s26 = smul.u32 (!%p3187_p2), 48, %s563_s1 }
  0xb7   : > { %s567_s23 = scalar_lea.vmem (!%p3187_p2), [#allocation2], %s2109_s26 }
  0xb9   : > { %2651 = dma.done.wait (%p2957_p7), %s564_s13, 768  }
  0xba   : > { %2653 = vsyncadd (%p2957_p7), %s564_s13, 4294966528  ;;  %p3188_p4 = scmp.ne.s32.totalorder %s3174_s20, 0 }
  0xbc   : > { %2655 = dma.done.wait (%p3188_p4), [#allocation5], 512  }
  0xbd   : > { %2657 = vsyncadd (%p3188_p4), [#allocation5], 4294966784 }
  0xbe   : > { %2659 = dma.done.wait (%p3188_p4), [#allocation8], 256  }
  0xbf   : > { %2661 = vsyncadd (%p3188_p4), [#allocation8], 4294967040 }
  0xc0   : > { %2663 = dma.done.wait (%p3188_p4), [#allocation11], 512  }
  0xc1   : > { %2665 = vsyncadd (%p3188_p4), [#allocation11], 4294966784 }
  0xc2   : > { %2667 = dma.done.wait (%p3188_p4), [#allocation14], 384  }
  0xc3   : > { %2669 = vsyncadd (%p3188_p4), [#allocation14], 4294966912 }
  0xc4   : > { %2671 = dma.done.wait (%p3188_p4), [#allocation17], 384  }
  0xc5   : > { %2673 = vsyncadd (%p3188_p4), [#allocation17], 4294966912 }
  0xc6   : > { %2675 = dma.done.wait (%p3188_p4), [#allocation20], 128  }
  0xc7   : > { %2677 = vsyncadd (%p3188_p4), [#allocation20], 4294967168  ;;  %v707_v0 = vld [vmem:[%s567_s23 + $0x8] sm:$0xff]  ;;  %v1969_v1 = vld [vmem:[%s567_s23 + $0x18] sm:$0xff]  ;;  %vm752_vm0 = vcmask 130048   ;;  %s3189_s4 = sld [smem:[#allocation33_spill]] }
  0xc8   : > { %v1971_v2 = vld [vmem:[%s567_s23 + $0x28] sm:$0xff]  ;;  %v3011_v3 = vmul.f32 255.0, %v707_v0  ;;  %v3013_v4 = vmul.f32 255.0, %v1969_v1  ;;  %v706_v6 = vld [vmem:[%s567_s23] sm:$0xff]  ;;  %v1968_v7 = vld [vmem:[%s567_s23 + $0x10] sm:$0xff]  ;;  %vm2717_vm3 = vmmov 0  }
  0xc9   : > { %v3015_v5 = vmul.f32 255.0, %v1971_v2  ;;  %v1970_v8 = vld [vmem:[%s567_s23 + $0x20] sm:$0xff]  ;;  %v3017_v9 = vmul.f32 255.0, %v706_v6  ;;  %v3019_v10 = vmul.f32 255.0, %v1968_v7  ;;  %v688_v25 = vld [vmem:[#allocation4 + $0x8] sm:$0xff]  ;;  %v694_v26 = vld [vmem:[#allocation10 + $0x8] sm:$0xff] }
  0xca   : > { %v3021_v11 = vmul.f32 255.0, %v1970_v8  ;;  %v687_v12 = vld [vmem:[#allocation4] sm:$0xff]  ;;  %v721_v13 = vmul.f32 0.299, %v3011_v3  ;;  %v723_v14 = vmul.f32 0.587, %v3013_v4  ;;  %2038 = vmatprep.subr.mxu1 %v694_v26 }
  0xcb   : > { %v727_v15 = vmul.f32 0.114, %v3015_v5  ;;  %2035 = vmatprep.mubr.msk.f32.mxu0 %vm752_vm0, %v687_v12  ;;  %v720_v16 = vmul.f32 0.299, %v3017_v9  ;;  %v722_v17 = vmul.f32 0.587, %v3019_v10  ;;  %2039 = vmatpush3.msra.mxu1 %v694_v26 }
  0xcc   : > { %v726_v18 = vmul.f32 0.114, %v3021_v11  ;;  %v725_v19 = vadd.f32 %v723_v14, %v721_v13  ;;  %v693_v27 = vld [vmem:[#allocation10] sm:$0xff]  ;;  %v700_v33 = vld [vmem:[#allocation16] sm:$0xff]  ;;  %v731_v54 = vmul.f32 -0.168736, %v3011_v3 }
  0xcd   : > { %v724_v20 = vadd.f32 %v722_v17, %v720_v16  ;;  %2040 = vmatprep.subr.mxu1 %v693_v27  ;;  %v689_v30 = vld [vmem:[#allocation6] sm:$0xff]  ;;  %v733_v55 = vmul.f32 0.331264, %v3013_v4  ;;  %v703_v58 = vld [vmem:[%s3189_s4 + $0x8] sm:$0xff]  ;;  %v730_v59 = vmul.f32 -0.168736, %v3017_v9 }
  0xce   : > { %v729_v21 = vadd.f32 %v727_v15, %v725_v19  ;;  %2041 = vmatpush3.msra.mxu1 %v693_v27  ;;  %v701_v31 = vld [vmem:[#allocation16 + $0x8] sm:$0xff]  ;;  %v732_v60 = vmul.f32 0.331264, %v3019_v10  ;;  %v702_v63 = vld [vmem:[%s3189_s4] sm:$0xff]  ;;  %v737_v1 = vmul.f32 0.5, %v3015_v5  ;;  %v736_v8 = vmul.f32 0.5, %v3021_v11 }
  0xcf   : > { %v728_v22 = vadd.f32 %v726_v18, %v724_v20  ;;  %v735_v0 = vsub.f32 %v731_v54, %v733_v55  ;;  %v690_v13 = vld [vmem:[#allocation6 + $0x8] sm:$0xff]  ;;  %v2716_v16 = vmov 0.0   ;;  %v3050_v17 = vld [vmem:[#allocation7] sm:$0xff]  ;;  %v696_v18 = vld [vmem:[#allocation12 + $0x8] sm:$0xff]  ;;  %s3190_s25 = sld [smem:[#allocation28_spill]]  ;;  %vm1246_vm5 = vcmask 64512  }
  0xd0   : > { %v1973_v23 = vadd.f32 -128.0, %v729_v21  ;;  %v734_v7 = vsub.f32 %v730_v59, %v732_v60  ;;  %2052 = vmatprep.subr.mxu1 %v696_v18  ;;  %v695_v19 = vld [vmem:[#allocation12] sm:$0xff]  ;;  %s3191_s29 = sld [smem:[#allocation34_spill]]  ;;  %v692_v55 = vld [vmem:[#allocation9] sm:$0xff] }
  0xd1   : > { %v1972_v24 = vadd.f32 -128.0, %v728_v22  ;;  %v739_v14 = vadd.f32 %v737_v1, %v735_v0  ;;  %v3059_v22 = vld [vmem:[#allocation13 + $0x8] sm:$0xff]  ;;  %s3192_s1 = sld [smem:[#allocation35_spill]] }
  0xd2   : > { %2031 = vmatprep.subr.mxu0 %v1973_v23  ;;  %v738_v15 = vadd.f32 %v736_v8, %v734_v7 }
  0xd3   : > { %2032 = vmatpush3.msra.mxu0 %v1973_v23 }
  0xd4   : > { %2033 = vmatprep.subr.mxu0 %v1972_v24 }
  0xd5   : > { %2034 = vmatpush3.msra.mxu0 %v1972_v24  ;;  %v3063_v24 = vld [vmem:[#allocation13] sm:$0xff]  ;;  %p670_p3 = scmp.lt.s32.totalorder %s3190_s25, 1 }
  0xd6   : > { %2036 = vmatmul.mubr.msk.f32.vlgmr.msra.gmra.mxu0 %vm752_vm0, %v688_v25 }
  0xd7   : > { %2049 = vmatprep.mubr.msk.f32.mxu0 %vm752_vm0, %v689_v30  ;;  %s3201_s25 = smov (!%p670_p3, %s3190_s25), 1 }
  0xd8   : > { %s1993_s27 = sshll.u32 %s3201_s25, 4 }
  0xd9   : > { %s677_s24 = scalar_lea.vmem %s3191_s29, %s1993_s27  ;;  %s686_s26 = scalar_lea.vmem %s3192_s1, %s1993_s27 }
 0x196   : > { %v2037_v28 = vpop.f32.mrf.mxu0 }
 0x198   : > { %v825_v29 = vpop.f32.mrf.mxu0 }
 0x199   : > { %2042 = vmatprep.mubr.msk.f32.mxu1 %vm752_vm0, %v825_v29  ;;  %v3084_v29 = vld [vmem:[#allocation18] sm:$0xff] }
 0x19a   : > { %2043 = vmatmul.mubr.msk.f32.vlgmr.msra.gmra.mxu1 %vm752_vm0, %v2037_v28 }
 0x19b   : > { %2053 = vmatpush3.msra.mxu1 %v696_v18 }
 0x19c   : > { %2054 = vmatprep.subr.mxu1 %v695_v19 }
 0x19d   : > { %2055 = vmatpush3.msra.mxu1 %v695_v19 }
 0x19e   : > { %2066 = vmatprep.subr.mxu1 %v2716_v16 }
 0x25a   : > { %v2044_v32 = vpop.f32.mrf.mxu1 }
 0x25b   : > { %v916_v34 = vmul.f32 %v2044_v32, %v701_v31 }
 0x25c   : > { %v906_v35 = vpop.f32.mrf.mxu1 }
 0x25d   : > { %v2120_v36 = vcvt.f32.s32 %v916_v34  ;;  %v915_v37 = vmul.f32 %v906_v35, %v700_v33  ;;  %v2118_v40 = vand.u32 2147483647, %v916_v34  ;;  %v2123_v41 = vand.u32 2147483648, %v916_v34 }
 0x25f   : > { %v2121_v38 = vcvt.s32.f32 %v2120_v36  ;;  %v2112_v39 = vcvt.f32.s32 %v915_v37  ;;  %v2110_v44 = vand.u32 2147483647, %v915_v37  ;;  %v2115_v45 = vand.u32 2147483648, %v915_v37 }
 0x260   : > { %vm2119_vm1 = vcmp.lt.f32.partialorder %v2118_v40, 8388608.0 }
 0x261   : > { %v2113_v42 = vcvt.s32.f32 %v2112_v39  ;;  %v2122_v43 = vand.u32 2147483647, %v2121_v38  ;;  %vm2111_vm2 = vcmp.lt.f32.partialorder %v2110_v44, 8388608.0 }
 0x263   : > { %v2124_v46 = vor.u32 %v2123_v41, %v2122_v43  ;;  %v2114_v47 = vand.u32 2147483647, %v2113_v42  ;;  %v741_v42 = vmul.f32 0.5, %v3011_v3  ;;  %v743_v43 = vmul.f32 0.418688, %v3013_v4 }
 0x265   : > { %v2125_v48 = vsel %vm2119_vm1, %v2124_v46, %v916_v34  ;;  %v2116_v49 = vor.u32 %v2115_v45, %v2114_v47  ;;  %v740_v45 = vmul.f32 0.5, %v3017_v9  ;;  %v742_v46 = vmul.f32 0.418688, %v3019_v10 }
 0x266   : > { %v920_v50 = vsub.f32 %v916_v34, %v2125_v48 }
 0x267   : > { %v2117_v51 = vsel %vm2111_vm2, %v2116_v49, %v915_v37  ;;  %v747_v49 = vmul.f32 0.081312, %v3015_v5  ;;  %v699_v5 = vld [vmem:[#allocation15] sm:$0xff] }
 0x268   : > { %v922_v52 = vmul.f32 %v920_v50, %v920_v50  ;;  %v919_v53 = vsub.f32 %v915_v37, %v2117_v51 }
 0x26a   : > { %v924_v56 = vmul.f32 %v922_v52, %v920_v50  ;;  %v921_v57 = vmul.f32 %v919_v53, %v919_v53  ;;  %v705_v50 = vld [vmem:[#allocation19] sm:$0xff]  ;;  %v744_v52 = vsub.f32 %v740_v45, %v742_v46 }
 0x26c   : > { %v926_v61 = vadd.f32 %v2125_v48, %v924_v56  ;;  %v923_v62 = vmul.f32 %v921_v57, %v919_v53  ;;  %v745_v48 = vsub.f32 %v741_v42, %v743_v43  ;;  %v746_v53 = vmul.f32 0.081312, %v3021_v11 }
 0x26e   : > { %v928_v2 = vmul.f32 %v926_v61, %v703_v58  ;;  %v925_v6 = vadd.f32 %v2117_v51, %v923_v62  ;;  %v749_v3 = vsub.f32 %v745_v48, %v747_v49  ;;  %v748_v4 = vsub.f32 %v744_v52, %v746_v53 }
 0x270   : > { %2045 = vmatprep.subr.mxu0 %v928_v2  ;;  %v927_v12 = vmul.f32 %v925_v6, %v702_v63 }
 0x271   : > { %2046 = vmatpush3.msra.mxu0 %v928_v2 }
 0x272   : > { %2047 = vmatprep.subr.mxu0 %v927_v12 }
 0x273   : > { %2048 = vmatpush3.msra.mxu0 %v927_v12 }
 0x274   : > { %2050 = vmatmul.mubr.msk.f32.vlgmr.msra.gmra.mxu0 %vm752_vm0, %v690_v13  ;;  %2059 = vmatprep.subr.mxu0 %v2716_v16 }
 0x275   : > { %2060 = vmatpush3.msra.mxu0 %v739_v14  ;;  %2063 = vmatprep.mubr.msk.f32.mxu0 %vm2717_vm3, %v2716_v16 }
 0x276   : > { %2061 = vmatprep.subr.mxu0 %v2716_v16 }
 0x277   : > { %2062 = vmatpush3.msra.mxu0 %v738_v15 }
 0x278   : > { %2064 = vmatmul.mubr.msk.f32.vlgmr.msra.gmra.mxu0 %vm752_vm0, %v3050_v17  ;;  %2073 = vmatprep.subr.mxu0 %v2716_v16 }
 0x279   : > { %2075 = vmatprep.mubr.msk.f32.mxu0 %vm2717_vm3, %v2716_v16 }
 0x334   : > { %v2051_v20 = vpop.f32.mrf.mxu0 }
 0x336   : > { %v1001_v21 = vpop.f32.mrf.mxu0 }
 0x337   : > { %2056 = vmatprep.mubr.msk.f32.mxu1 %vm752_vm0, %v1001_v21 }
 0x338   : > { %2057 = vmatmul.mubr.msk.f32.vlgmr.msra.gmra.mxu1 %vm752_vm0, %v2051_v20  ;;  %v1162_v23 = vpop.f32.mrf.mxu0 }
 0x339   : > { %2067 = vmatpush3.msra.mxu1 %v3059_v22  ;;  %2070 = vmatprep.mubr.msk.f32.mxu1 %vm2717_vm3, %v2716_v16 }
 0x33a   : > { %2068 = vmatprep.subr.mxu1 %v2716_v16  ;;  %v2065_v25 = vpop.f32.mrf.mxu0 }
 0x33b   : > { %2069 = vmatpush3.msra.mxu1 %v3063_v24 }
 0x33c   : > { %2071 = vmatmul.mubr.msk.f32.vlgmr.msra.gmra.mxu1 %vm752_vm0, %v1162_v23  ;;  %2078 = vmatprep.subr.mxu1 %v2716_v16 }
 0x33d   : > { %2080 = vmatprep.mubr.msk.f32.mxu1 %vm2717_vm3, %v2716_v16  ;;  %2079 = vmatpush3.msra.mxu1 %v699_v5 }
 0x33e   : > { %2090 = vmatprep.subr.mxu1 %v2716_v16 }
 0x3f8   : > { %v2058_v26 = vpop.f32.mrf.mxu1 }
 0x3f9   : > { %v1088_v27 = vadd.f32 128.0, %v2058_v26 }
 0x3fa   : > { %v1082_v28 = vpop.f32.mrf.mxu1 }
 0x3fb   : > { %1092 = vst.msk [vmem:[%s677_s24 + $0x8] sm:$0xff] %vm752_vm0, %v1088_v27  ;;  %v1083_v30 = vadd.f32 128.0, %v1082_v28 }
 0x3fc   : > { %v1235_v31 = vpop.f32.mrf.mxu1 }
 0x3fd   : > { %1091 = vst.msk [vmem:[%s677_s24] sm:$0xff] %vm752_vm0, %v1083_v30  ;;  %v1239_v32 = vmul.f32 %v1235_v31, %v3084_v29 }
 0x3fe   : > { %v2072_v33 = vpop.f32.mrf.mxu1 }
 0x3ff   : > { %v2128_v34 = vcvt.f32.s32 %v1239_v32  ;;  %v2126_v36 = vand.u32 2147483647, %v1239_v32  ;;  %v2131_v38 = vand.u32 2147483648, %v1239_v32 }
 0x401   : > { %v2129_v35 = vcvt.s32.f32 %v2128_v34  ;;  %vm2127_vm4 = vcmp.lt.f32.partialorder %v2126_v36, 8388608.0 }
 0x403   : > { %v2130_v37 = vand.u32 2147483647, %v2129_v35 }
 0x405   : > { %v2132_v39 = vor.u32 %v2131_v38, %v2130_v37 }
 0x407   : > { %v2133_v40 = vsel %vm2127_vm4, %v2132_v39, %v1239_v32 }
 0x408   : > { %v1241_v41 = vsub.f32 %v1239_v32, %v2133_v40 }
 0x40a   : > { %v1242_v44 = vmul.f32 %v1241_v41, %v1241_v41 }
 0x40c   : > { %v1243_v47 = vmul.f32 %v1242_v44, %v1241_v41 }
 0x40e   : > { %v1244_v51 = vadd.f32 %v2133_v40, %v1243_v47 }
 0x410   : > { %v1245_v54 = vmul.f32 %v1244_v51, %v705_v50 }
 0x412   : > { %2074 = vmatpush3.msra.mxu0 %v1245_v54 }
 0x413   : > { %2076 = vmatmul.mubr.msk.f32.vlgmr.msra.gmra.mxu0 %vm1246_vm5, %v692_v55  ;;  %2083 = vmatprep.subr.mxu0 %v2716_v16 }
 0x414   : > { %2084 = vmatpush3.msra.mxu0 %v749_v3  ;;  %2087 = vmatprep.mubr.msk.f32.mxu0 %vm2717_vm3, %v2716_v16 }
 0x415   : > { %2085 = vmatprep.subr.mxu0 %v2716_v16 }
 0x416   : > { %2086 = vmatpush3.msra.mxu0 %v748_v4 }
 0x417   : > { %2088 = vmatmul.mubr.msk.f32.vlgmr.msra.gmra.mxu0 %vm752_vm0, %v3050_v17  ;;  %2097 = vmatprep.subr.mxu0 %v2716_v16 }
 0x418   : > { %2099 = vmatprep.mubr.msk.f32.mxu0 %vm2717_vm3, %v2716_v16 }
 0x4d3   : > { %v1316_v9 = vpop.f32.mrf.mxu0 }
 0x4d4   : > { %2081 = vmatmul.mubr.msk.f32.vlgmr.msra.gmra.mxu1 %vm1246_vm5, %v1316_v9 }
 0x4d5   : > { %v2077_v10 = vpop.f32.mrf.mxu0  ;;  %2091 = vmatpush3.msra.mxu1 %v3059_v22  ;;  %2094 = vmatprep.mubr.msk.f32.mxu1 %vm2717_vm3, %v2716_v16 }
 0x4d6   : > { %2092 = vmatprep.subr.mxu1 %v2716_v16 }
 0x4d7   : > { %v1460_v11 = vpop.f32.mrf.mxu0  ;;  %2093 = vmatpush3.msra.mxu1 %v3063_v24 }
 0x4d8   : > { %2095 = vmatmul.mubr.msk.f32.vlgmr.msra.gmra.mxu1 %vm752_vm0, %v1460_v11  ;;  %2102 = vmatprep.subr.mxu1 %v2716_v16 }
 0x4d9   : > { %v2089_v56 = vpop.f32.mrf.mxu0  ;;  %2103 = vmatpush3.msra.mxu1 %v699_v5  ;;  %2104 = vmatprep.mubr.msk.f32.mxu1 %vm2717_vm3, %v2716_v16 }
 0x594   : > { %v1389_v57 = vpop.f32.mrf.mxu1 }
 0x595   : > { %v1390_v58 = vadd.f32 128.0, %v1389_v57 }
 0x596   : > { %v2082_v59 = vpop.f32.mrf.mxu1 }
 0x597   : > { %1393 = vst.msk [vmem:[%s686_s26] sm:$0xff] %vm1246_vm5, %v1390_v58 }
 0x598   : > { %v1533_v60 = vpop.f32.mrf.mxu1 }
 0x599   : > { %v1537_v61 = vmul.f32 %v1533_v60, %v3084_v29 }
 0x59a   : > { %v2096_v62 = vpop.f32.mrf.mxu1 }
 0x59b   : > { %v2136_v63 = vcvt.f32.s32 %v1537_v61  ;;  %v2134_v1 = vand.u32 2147483647, %v1537_v61  ;;  %v2139_v6 = vand.u32 2147483648, %v1537_v61 }
 0x59d   : > { %v2137_v0 = vcvt.s32.f32 %v2136_v63  ;;  %vm2135_vm6 = vcmp.lt.f32.partialorder %v2134_v1, 8388608.0 }
 0x59f   : > { %v2138_v2 = vand.u32 2147483647, %v2137_v0 }
 0x5a1   : > { %v2140_v7 = vor.u32 %v2139_v6, %v2138_v2 }
 0x5a3   : > { %v2141_v8 = vsel %vm2135_vm6, %v2140_v7, %v1537_v61 }
 0x5a4   : > { %v1539_v12 = vsub.f32 %v1537_v61, %v2141_v8 }
 0x5a6   : > { %v1540_v13 = vmul.f32 %v1539_v12, %v1539_v12 }
 0x5a8   : > { %v1541_v14 = vmul.f32 %v1540_v13, %v1539_v12 }
 0x5aa   : > { %v1542_v15 = vadd.f32 %v2141_v8, %v1541_v14 }
 0x5ac   : > { %v1543_v16 = vmul.f32 %v1542_v15, %v705_v50 }
 0x5ae   : > { %2098 = vmatpush3.msra.mxu0 %v1543_v16 }
 0x5af   : > { %2100 = vmatmul.mubr.msk.f32.vlgmr.msra.gmra.mxu0 %vm1246_vm5, %v692_v55 }
 0x66f   : > { %v1610_v17 = vpop.f32.mrf.mxu0 }
 0x670   : > { %2105 = vmatmul.mubr.msk.f32.vlgmr.msra.gmra.mxu1 %vm1246_vm5, %v1610_v17 }
 0x671   : > { %v2101_v18 = vpop.f32.mrf.mxu0 }
 0x730   : > { %v1683_v19 = vpop.f32.mrf.mxu1 }
 0x731   : > { %v1684_v20 = vadd.f32 128.0, %v1683_v19 }
 0x732   : > { %v2106_v21 = vpop.f32.mrf.mxu1 }
 0x733   : > { %1990 = vst.msk [vmem:[%s686_s26 + $0x8] sm:$0xff] %vm1246_vm5, %v1684_v20 }
 0x734 PF: > { %s34_s18 = sadd.s32 1, %s2700_s18   ;;  %s3193_s29 = smov %s2684_s30 }
 0x735   : > { %p31_p1 = scmp.ge.s32.totalorder %s34_s18, 4   ;;  %s3194_s30 = smov %s2688_s15 }
 0x736   : > { %s3195_s15 = smov %s2964_s10  ;;  %s3196_s16 = smov %s2696_s17 }
 0x737   : > { %s3197_s17 = smov %s3199_s19  ;;  %33 = sbr.rel (!%p31_p1) target bundleno = 18 (0x12), region = 171 }
 0x73c   :  { %1741 = vsyncpa [#allocation3], 1 }
 0x73d   :  { %1743 = vsyncpa [#allocation3 + $0x1], 1 }
 0x73e   :  { %1744 = vsyncpa [#allocation5], 1 }
 0x73f   :  { %1745 = vsyncpa [#allocation8], 1 }
 0x740   :  { %1746 = vsyncpa [#allocation11], 1 }
 0x741   :  { %1747 = vsyncpa [#allocation14], 1 }
 0x742   :  { %1748 = vsyncpa [#allocation17], 1 }
 0x743   :  { %1749 = vsyncpa [#allocation20], 1 }

</bundles_post_ra>
